<compile_context>
chip_gen: v5e
topology: v5e:2x2
jax: 0.10.0
libtpu: 0.0.40
codegen_flags: <defaults>
</compile_context>

<pallas_src>
import jax
import jax.numpy as jnp
from jax.experimental import pallas as pl
from jax.experimental.pallas import tpu as pltpu

SEQ = 3
HIDDEN = 20
INPUT_SIZE = 1
NUM_GATES = 4  # PyTorch gate order: i, f, g, o
CHUNK = 128    # lane-chunk processed per inner iteration (one vreg width)


def lstm_kernel(x_ref, wih_ref, whh_ref, b_ref, wl_ref, b_lin_ref, out_ref):
    f32 = jnp.float32

    # Weight slabs (constant index_maps -> VMEM-resident across the grid).
    wih = [wih_ref[g] for g in range(NUM_GATES)]     # (H, 1)  = W_ih_gate
    whh = [whh_ref[g] for g in range(NUM_GATES)]     # (H, H)  = W_hh_gate
    bg = [b_ref[g] for g in range(NUM_GATES)]        # (H, 1)  = b_ih + b_hh
    wl = [wl_ref[t] for t in range(SEQ)]             # (1, H)  = W_lin[:, t*H:(t+1)*H]
    b_lin = b_lin_ref[...]                           # (1, 1)

    tb = out_ref.shape[1]
    # Statically unrolled lane-chunk loop; each chunk's values die at its store.
    for c0 in range(0, tb, CHUNK):
        cw = min(CHUNK, tb - c0)
        x = x_ref[:, c0:c0 + cw]                     # (SEQ, cw), aligned static slice

        def pre(t, g):
            # Input projection + bias, computed right where it is consumed
            # (no hoisted live ranges).  (H,1)*(1,cw)+(H,1) -> (H,cw)
            return wih[g] * x[t:t + 1, :] + bg[g]

        # t = 0: h0 = c0 = 0 => recurrent matmuls and forget-gate term vanish.
        i_g = jax.nn.sigmoid(pre(0, 0))
        g_g = jnp.tanh(pre(0, 2))
        o_g = jax.nn.sigmoid(pre(0, 3))
        c = i_g * g_g
        h = o_g * jnp.tanh(c)                        # (H, cw)
        acc = jnp.dot(wl[0], h, preferred_element_type=f32)   # (1, cw)

        for t in range(1, SEQ):
            i_g = jax.nn.sigmoid(pre(t, 0) + jnp.dot(whh[0], h, preferred_element_type=f32))
            f_g = jax.nn.sigmoid(pre(t, 1) + jnp.dot(whh[1], h, preferred_element_type=f32))
            g_g = jnp.tanh(pre(t, 2) + jnp.dot(whh[2], h, preferred_element_type=f32))
            o_g = jax.nn.sigmoid(pre(t, 3) + jnp.dot(whh[3], h, preferred_element_type=f32))
            c = f_g * c + i_g * g_g
            h = o_g * jnp.tanh(c)
            acc = acc + jnp.dot(wl[t], h, preferred_element_type=f32)

        # Lane-dense row store (unmasked vst for full 128-lane chunks).
        out_ref[:, c0:c0 + cw] = acc + b_lin


def _round_up(v, m):
    return ((v + m - 1) // m) * m


def lstm_forward(x, params, *, tile_b=512):
    """x: (B, SEQ, 1) float32 -> (B, 1) float32 (matches the PyTorch forward)."""
    w_ih, w_hh, b_ih, b_hh, w_lin, b_lin = params
    B = x.shape[0]

    # Batch on lanes: (SEQ, B).  Tiny wrapper transpose (B*3 floats).
    x2d = x.reshape(B, SEQ).astype(jnp.float32).T                                # (SEQ, B)

    # Per-gate / per-timestep weight stacks in column-vector orientation
    # (gates = W @ h), so no in-kernel transposes or 4H-lane slicing.
    wih_s = w_ih.reshape(NUM_GATES, HIDDEN, INPUT_SIZE).astype(jnp.float32)      # (4, H, 1)
    whh_s = w_hh.reshape(NUM_GATES, HIDDEN, HIDDEN).astype(jnp.float32)          # (4, H, H)
    b_s = (b_ih + b_hh).reshape(NUM_GATES, HIDDEN, 1).astype(jnp.float32)        # (4, H, 1)
    # feat layout is [h_0 | h_1 | h_2]; split the linear per timestep.
    wl_s = w_lin.reshape(SEQ, 1, HIDDEN).astype(jnp.float32)                     # (T, 1, H)
    b_lin_2d = b_lin.reshape(1, 1).astype(jnp.float32)                           # (1, 1)

    # Batch tiling: lane-multiple tiles, >= 2 grid steps for large B (v7x
    # megacore), no wrapper-side padding (Pallas masks the partial last block).
    if B <= 128:
        TB = B
    else:
        TB = _round_up(min(max(tile_b, 1), B), 128)
        TB = min(TB, _round_up(pl.cdiv(B, 2), 128))
    grid = (pl.cdiv(B, TB),)

    out = pl.pallas_call(
        lstm_kernel,
        out_shape=jax.ShapeDtypeStruct((1, B), jnp.float32),
        grid=grid,
        in_specs=[
            pl.BlockSpec((SEQ, TB), lambda i: (0, i)),                          # x tile (batch on lanes)
            pl.BlockSpec((NUM_GATES, HIDDEN, INPUT_SIZE), lambda i: (0, 0, 0)),  # w_ih per gate
            pl.BlockSpec((NUM_GATES, HIDDEN, HIDDEN), lambda i: (0, 0, 0)),      # w_hh per gate
            pl.BlockSpec((NUM_GATES, HIDDEN, 1), lambda i: (0, 0, 0)),           # bias per gate
            pl.BlockSpec((SEQ, 1, HIDDEN), lambda i: (0, 0, 0)),                 # w_lin per timestep
            pl.BlockSpec((1, 1), lambda i: (0, 0)),                              # b_lin
        ],
        out_specs=pl.BlockSpec((1, TB), lambda i: (0, i)),                       # lane-dense row
        compiler_params=pltpu.CompilerParams(dimension_semantics=("parallel",)),
    )(x2d, wih_s, whh_s, b_s, wl_s, b_lin_2d)

    return out.reshape(B, 1)


def init_params(key):
    """Deterministic init matching the PyTorch module's parameter shapes."""
    ks = jax.random.split(key, 6)
    bound = 1.0 / jnp.sqrt(jnp.float32(HIDDEN))
    w_ih = jax.random.uniform(ks[0], (4 * HIDDEN, INPUT_SIZE),
                              minval=-bound, maxval=bound, dtype=jnp.float32)
    w_hh = jax.random.uniform(ks[1], (4 * HIDDEN, HIDDEN),
                              minval=-bound, maxval=bound, dtype=jnp.float32)
    b_ih = jax.random.uniform(ks[2], (4 * HIDDEN,),
                              minval=-bound, maxval=bound, dtype=jnp.float32)
    b_hh = jax.random.uniform(ks[3], (4 * HIDDEN,),
                              minval=-bound, maxval=bound, dtype=jnp.float32)
    lbound = 1.0 / jnp.sqrt(jnp.float32(HIDDEN * SEQ))
    w_lin = jax.random.uniform(ks[4], (1, HIDDEN * SEQ),
                               minval=-lbound, maxval=lbound, dtype=jnp.float32)
    b_lin = jax.random.uniform(ks[5], (1,),
                               minval=-lbound, maxval=lbound, dtype=jnp.float32)
    return (w_ih, w_hh, b_ih, b_hh, w_lin, b_lin)


def lstm_forward_ref(x, params):
    """Pure-JAX reference of the PyTorch forward, for correctness checking."""
    w_ih, w_hh, b_ih, b_hh, w_lin, b_lin = params
    B = x.shape[0]
    h = jnp.zeros((B, HIDDEN), jnp.float32)
    c = jnp.zeros((B, HIDDEN), jnp.float32)
    outs = []
    for t in range(SEQ):
        x_t = x[:, t, :]                                      # (B, 1)
        gates = x_t @ w_ih.T + h @ w_hh.T + b_ih + b_hh
        i_g = jax.nn.sigmoid(gates[:, 0 * HIDDEN:1 * HIDDEN])
        f_g = jax.nn.sigmoid(gates[:, 1 * HIDDEN:2 * HIDDEN])
        g_g = jnp.tanh(gates[:, 2 * HIDDEN:3 * HIDDEN])
        o_g = jax.nn.sigmoid(gates[:, 3 * HIDDEN:4 * HIDDEN])
        c = f_g * c + i_g * g_g
        h = o_g * jnp.tanh(c)
        outs.append(h)
    feat = jnp.stack(outs, axis=1).reshape(B, SEQ * HIDDEN)
    return feat @ w_lin.T + b_lin


if __name__ == "__main__":
    key = jax.random.PRNGKey(0)
    pkey, xkey, xkey2 = jax.random.split(key, 3)
    params = init_params(pkey)

    # Small single-tile check (B <= 128).
    B = 4
    x = jax.random.normal(xkey, (B, SEQ, INPUT_SIZE), dtype=jnp.float32)
    out = jax.block_until_ready(lstm_forward(x, params))
    ref = lstm_forward_ref(x, params)
    assert out.shape == (B, 1)
    assert jnp.allclose(out, ref, rtol=1e-5, atol=1e-5), "mismatch vs reference (single tile)"

    # Multi-tile check: default tiling -> TB=256, grid=(2,), partial last block.
    B2 = 300
    x2 = jax.random.normal(xkey2, (B2, SEQ, INPUT_SIZE), dtype=jnp.float32)
    out2 = jax.block_until_ready(lstm_forward(x2, params))
    ref2 = lstm_forward_ref(x2, params)
    assert out2.shape == (B2, 1)
    assert jnp.allclose(out2, ref2, rtol=1e-5, atol=1e-5), "mismatch vs reference (gridded)"

    # Multi-tile check with small requested tile (rounded up to 128 lanes) -> grid=(3,).
    out3 = jax.block_until_ready(lstm_forward(x2, params, tile_b=8))
    assert jnp.allclose(out3, ref2, rtol=1e-5, atol=1e-5), "mismatch vs reference (tile_b rounded)"

    print("KERNEL_OK")
</pallas_src>

<mosaic_0001>
module attributes {stable_mosaic.version = 11 : i64} {
  func.func @lstm_kernel(%arg0: i32, %arg1: memref<3x4xf32, #tpu.memory_space<vmem>>, %arg2: memref<4x20x1xf32, #tpu.memory_space<vmem>>, %arg3: memref<4x20x20xf32, #tpu.memory_space<vmem>>, %arg4: memref<4x20x1xf32, #tpu.memory_space<vmem>>, %arg5: memref<3x1x20xf32, #tpu.memory_space<vmem>>, %arg6: memref<1x1xf32, #tpu.memory_space<vmem>>, %arg7: memref<1x4xf32, #tpu.memory_space<vmem>>) attributes {dimension_semantics = [#tpu.dimension_semantics<parallel>], iteration_bounds = array<i64: 1>, scalar_prefetch = 0 : i64, scratch_operands = 0 : i64, tpu.core_type = #tpu.core_type<tc>, window_params = [{transform_indices = @transform_0, window_bounds = array<i64: 3, 4>}, {pipeline_mode = #tpu.pipeline_mode<synchronous>, transform_indices = @transform_1, window_bounds = array<i64: 4, 20, 1>}, {pipeline_mode = #tpu.pipeline_mode<synchronous>, transform_indices = @transform_2, window_bounds = array<i64: 4, 20, 20>}, {pipeline_mode = #tpu.pipeline_mode<synchronous>, transform_indices = @transform_3, window_bounds = array<i64: 4, 20, 1>}, {pipeline_mode = #tpu.pipeline_mode<synchronous>, transform_indices = @transform_4, window_bounds = array<i64: 3, 1, 20>}, {pipeline_mode = #tpu.pipeline_mode<synchronous>, transform_indices = @transform_5, window_bounds = array<i64: 1, 1>}, {transform_indices = @transform_6, window_bounds = array<i64: 1, 4>}]} {
    %c0 = arith.constant 0 : index
    %c0_0 = arith.constant 0 : index
    %c0_1 = arith.constant 0 : index
    %0 = vector.load %arg2[%c0, %c0_0, %c0_1] : memref<4x20x1xf32, #tpu.memory_space<vmem>>, vector<1x20x1xf32>
    %1 = vector.shape_cast %0 : vector<1x20x1xf32> to vector<20x1xf32>
    %c1 = arith.constant 1 : index
    %c0_2 = arith.constant 0 : index
    %c0_3 = arith.constant 0 : index
    %2 = vector.load %arg2[%c1, %c0_2, %c0_3] : memref<4x20x1xf32, #tpu.memory_space<vmem>>, vector<1x20x1xf32>
    %3 = vector.shape_cast %2 : vector<1x20x1xf32> to vector<20x1xf32>
    %c2 = arith.constant 2 : index
    %c0_4 = arith.constant 0 : index
    %c0_5 = arith.constant 0 : index
    %4 = vector.load %arg2[%c2, %c0_4, %c0_5] : memref<4x20x1xf32, #tpu.memory_space<vmem>>, vector<1x20x1xf32>
    %5 = vector.shape_cast %4 : vector<1x20x1xf32> to vector<20x1xf32>
    %c3 = arith.constant 3 : index
    %c0_6 = arith.constant 0 : index
    %c0_7 = arith.constant 0 : index
    %6 = vector.load %arg2[%c3, %c0_6, %c0_7] : memref<4x20x1xf32, #tpu.memory_space<vmem>>, vector<1x20x1xf32>
    %7 = vector.shape_cast %6 : vector<1x20x1xf32> to vector<20x1xf32>
    %c0_8 = arith.constant 0 : index
    %c0_9 = arith.constant 0 : index
    %c0_10 = arith.constant 0 : index
    %8 = vector.load %arg3[%c0_8, %c0_9, %c0_10] : memref<4x20x20xf32, #tpu.memory_space<vmem>>, vector<1x20x20xf32>
    %9 = vector.shape_cast %8 : vector<1x20x20xf32> to vector<20x20xf32>
    %c1_11 = arith.constant 1 : index
    %c0_12 = arith.constant 0 : index
    %c0_13 = arith.constant 0 : index
    %10 = vector.load %arg3[%c1_11, %c0_12, %c0_13] : memref<4x20x20xf32, #tpu.memory_space<vmem>>, vector<1x20x20xf32>
    %11 = vector.shape_cast %10 : vector<1x20x20xf32> to vector<20x20xf32>
    %c2_14 = arith.constant 2 : index
    %c0_15 = arith.constant 0 : index
    %c0_16 = arith.constant 0 : index
    %12 = vector.load %arg3[%c2_14, %c0_15, %c0_16] : memref<4x20x20xf32, #tpu.memory_space<vmem>>, vector<1x20x20xf32>
    %13 = vector.shape_cast %12 : vector<1x20x20xf32> to vector<20x20xf32>
    %c3_17 = arith.constant 3 : index
    %c0_18 = arith.constant 0 : index
    %c0_19 = arith.constant 0 : index
    %14 = vector.load %arg3[%c3_17, %c0_18, %c0_19] : memref<4x20x20xf32, #tpu.memory_space<vmem>>, vector<1x20x20xf32>
    %15 = vector.shape_cast %14 : vector<1x20x20xf32> to vector<20x20xf32>
    %c0_20 = arith.constant 0 : index
    %c0_21 = arith.constant 0 : index
    %c0_22 = arith.constant 0 : index
    %16 = vector.load %arg4[%c0_20, %c0_21, %c0_22] : memref<4x20x1xf32, #tpu.memory_space<vmem>>, vector<1x20x1xf32>
    %17 = vector.shape_cast %16 : vector<1x20x1xf32> to vector<20x1xf32>
    %c1_23 = arith.constant 1 : index
    %c0_24 = arith.constant 0 : index
    %c0_25 = arith.constant 0 : index
    %18 = vector.load %arg4[%c1_23, %c0_24, %c0_25] : memref<4x20x1xf32, #tpu.memory_space<vmem>>, vector<1x20x1xf32>
    %19 = vector.shape_cast %18 : vector<1x20x1xf32> to vector<20x1xf32>
    %c2_26 = arith.constant 2 : index
    %c0_27 = arith.constant 0 : index
    %c0_28 = arith.constant 0 : index
    %20 = vector.load %arg4[%c2_26, %c0_27, %c0_28] : memref<4x20x1xf32, #tpu.memory_space<vmem>>, vector<1x20x1xf32>
    %21 = vector.shape_cast %20 : vector<1x20x1xf32> to vector<20x1xf32>
    %c3_29 = arith.constant 3 : index
    %c0_30 = arith.constant 0 : index
    %c0_31 = arith.constant 0 : index
    %22 = vector.load %arg4[%c3_29, %c0_30, %c0_31] : memref<4x20x1xf32, #tpu.memory_space<vmem>>, vector<1x20x1xf32>
    %23 = vector.shape_cast %22 : vector<1x20x1xf32> to vector<20x1xf32>
    %c0_32 = arith.constant 0 : index
    %c0_33 = arith.constant 0 : index
    %c0_34 = arith.constant 0 : index
    %24 = vector.load %arg5[%c0_32, %c0_33, %c0_34] : memref<3x1x20xf32, #tpu.memory_space<vmem>>, vector<1x1x20xf32>
    %25 = vector.shape_cast %24 : vector<1x1x20xf32> to vector<1x20xf32>
    %c1_35 = arith.constant 1 : index
    %c0_36 = arith.constant 0 : index
    %c0_37 = arith.constant 0 : index
    %26 = vector.load %arg5[%c1_35, %c0_36, %c0_37] : memref<3x1x20xf32, #tpu.memory_space<vmem>>, vector<1x1x20xf32>
    %27 = vector.shape_cast %26 : vector<1x1x20xf32> to vector<1x20xf32>
    %c2_38 = arith.constant 2 : index
    %c0_39 = arith.constant 0 : index
    %c0_40 = arith.constant 0 : index
    %28 = vector.load %arg5[%c2_38, %c0_39, %c0_40] : memref<3x1x20xf32, #tpu.memory_space<vmem>>, vector<1x1x20xf32>
    %29 = vector.shape_cast %28 : vector<1x1x20xf32> to vector<1x20xf32>
    %c0_41 = arith.constant 0 : index
    %c0_42 = arith.constant 0 : index
    %30 = vector.load %arg6[%c0_41, %c0_42] : memref<1x1xf32, #tpu.memory_space<vmem>>, vector<1x1xf32>
    %c0_43 = arith.constant 0 : index
    %c0_44 = arith.constant 0 : index
    %31 = vector.load %arg1[%c0_43, %c0_44] : memref<3x4xf32, #tpu.memory_space<vmem>>, vector<3x4xf32>
    %32 = vector.extract_strided_slice %31 {offsets = [0, 0], sizes = [1, 4], strides = [1, 1]} : vector<3x4xf32> to vector<1x4xf32>
    %33 = vector.broadcast %1 : vector<20x1xf32> to vector<20x4xf32>
    %34 = vector.broadcast %32 : vector<1x4xf32> to vector<20x4xf32>
    %35 = arith.mulf %33, %34 : vector<20x4xf32>
    %36 = vector.broadcast %17 : vector<20x1xf32> to vector<20x4xf32>
    %37 = arith.addf %35, %36 : vector<20x4xf32>
    %38 = arith.negf %37 : vector<20x4xf32>
    %39 = math.exp %38 : vector<20x4xf32>
    %cst = arith.constant 1.000000e+00 : f32
    %40 = vector.broadcast %cst : f32 to vector<20x4xf32>
    %41 = arith.addf %40, %39 : vector<20x4xf32>
    %42 = arith.divf %40, %41 : vector<20x4xf32>
    %43 = vector.extract_strided_slice %31 {offsets = [0, 0], sizes = [1, 4], strides = [1, 1]} : vector<3x4xf32> to vector<1x4xf32>
    %44 = vector.broadcast %5 : vector<20x1xf32> to vector<20x4xf32>
    %45 = vector.broadcast %43 : vector<1x4xf32> to vector<20x4xf32>
    %46 = arith.mulf %44, %45 : vector<20x4xf32>
    %47 = vector.broadcast %21 : vector<20x1xf32> to vector<20x4xf32>
    %48 = arith.addf %46, %47 : vector<20x4xf32>
    %49 = math.tanh %48 : vector<20x4xf32>
    %50 = vector.extract_strided_slice %31 {offsets = [0, 0], sizes = [1, 4], strides = [1, 1]} : vector<3x4xf32> to vector<1x4xf32>
    %51 = vector.broadcast %7 : vector<20x1xf32> to vector<20x4xf32>
    %52 = vector.broadcast %50 : vector<1x4xf32> to vector<20x4xf32>
    %53 = arith.mulf %51, %52 : vector<20x4xf32>
    %54 = vector.broadcast %23 : vector<20x1xf32> to vector<20x4xf32>
    %55 = arith.addf %53, %54 : vector<20x4xf32>
    %56 = arith.negf %55 : vector<20x4xf32>
    %57 = math.exp %56 : vector<20x4xf32>
    %cst_45 = arith.constant 1.000000e+00 : f32
    %58 = vector.broadcast %cst_45 : f32 to vector<20x4xf32>
    %59 = arith.addf %58, %57 : vector<20x4xf32>
    %60 = arith.divf %58, %59 : vector<20x4xf32>
    %61 = arith.mulf %42, %49 : vector<20x4xf32>
    %62 = math.tanh %61 : vector<20x4xf32>
    %63 = arith.mulf %60, %62 : vector<20x4xf32>
    %cst_46 = arith.constant dense<0.000000e+00> : vector<1x4xf32>
    %64 = tpu.matmul %25, %63, %cst_46 {dimension_numbers = #tpu.dot_dimension_numbers<[1], [0], [0], [1], [0, 0, 1, 1], [], []>} : vector<1x20xf32>, vector<20x4xf32>, vector<1x4xf32> -> vector<1x4xf32>
    %65 = vector.extract_strided_slice %31 {offsets = [1, 0], sizes = [1, 4], strides = [1, 1]} : vector<3x4xf32> to vector<1x4xf32>
    %66 = vector.broadcast %1 : vector<20x1xf32> to vector<20x4xf32>
    %67 = vector.broadcast %65 : vector<1x4xf32> to vector<20x4xf32>
    %68 = arith.mulf %66, %67 : vector<20x4xf32>
    %69 = vector.broadcast %17 : vector<20x1xf32> to vector<20x4xf32>
    %70 = arith.addf %68, %69 : vector<20x4xf32>
    %cst_47 = arith.constant dense<0.000000e+00> : vector<20x4xf32>
    %71 = tpu.matmul %9, %63, %cst_47 {dimension_numbers = #tpu.dot_dimension_numbers<[1], [0], [0], [1], [0, 0, 1, 1], [], []>} : vector<20x20xf32>, vector<20x4xf32>, vector<20x4xf32> -> vector<20x4xf32>
    %72 = arith.addf %70, %71 : vector<20x4xf32>
    %73 = arith.negf %72 : vector<20x4xf32>
    %74 = math.exp %73 : vector<20x4xf32>
    %cst_48 = arith.constant 1.000000e+00 : f32
    %75 = vector.broadcast %cst_48 : f32 to vector<20x4xf32>
    %76 = arith.addf %75, %74 : vector<20x4xf32>
    %77 = arith.divf %75, %76 : vector<20x4xf32>
    %78 = vector.extract_strided_slice %31 {offsets = [1, 0], sizes = [1, 4], strides = [1, 1]} : vector<3x4xf32> to vector<1x4xf32>
    %79 = vector.broadcast %3 : vector<20x1xf32> to vector<20x4xf32>
    %80 = vector.broadcast %78 : vector<1x4xf32> to vector<20x4xf32>
    %81 = arith.mulf %79, %80 : vector<20x4xf32>
    %82 = vector.broadcast %19 : vector<20x1xf32> to vector<20x4xf32>
    %83 = arith.addf %81, %82 : vector<20x4xf32>
    %cst_49 = arith.constant dense<0.000000e+00> : vector<20x4xf32>
    %84 = tpu.matmul %11, %63, %cst_49 {dimension_numbers = #tpu.dot_dimension_numbers<[1], [0], [0], [1], [0, 0, 1, 1], [], []>} : vector<20x20xf32>, vector<20x4xf32>, vector<20x4xf32> -> vector<20x4xf32>
    %85 = arith.addf %83, %84 : vector<20x4xf32>
    %86 = arith.negf %85 : vector<20x4xf32>
    %87 = math.exp %86 : vector<20x4xf32>
    %cst_50 = arith.constant 1.000000e+00 : f32
    %88 = vector.broadcast %cst_50 : f32 to vector<20x4xf32>
    %89 = arith.addf %88, %87 : vector<20x4xf32>
    %90 = arith.divf %88, %89 : vector<20x4xf32>
    %91 = vector.extract_strided_slice %31 {offsets = [1, 0], sizes = [1, 4], strides = [1, 1]} : vector<3x4xf32> to vector<1x4xf32>
    %92 = vector.broadcast %5 : vector<20x1xf32> to vector<20x4xf32>
    %93 = vector.broadcast %91 : vector<1x4xf32> to vector<20x4xf32>
    %94 = arith.mulf %92, %93 : vector<20x4xf32>
    %95 = vector.broadcast %21 : vector<20x1xf32> to vector<20x4xf32>
    %96 = arith.addf %94, %95 : vector<20x4xf32>
    %cst_51 = arith.constant dense<0.000000e+00> : vector<20x4xf32>
    %97 = tpu.matmul %13, %63, %cst_51 {dimension_numbers = #tpu.dot_dimension_numbers<[1], [0], [0], [1], [0, 0, 1, 1], [], []>} : vector<20x20xf32>, vector<20x4xf32>, vector<20x4xf32> -> vector<20x4xf32>
    %98 = arith.addf %96, %97 : vector<20x4xf32>
    %99 = math.tanh %98 : vector<20x4xf32>
    %100 = vector.extract_strided_slice %31 {offsets = [1, 0], sizes = [1, 4], strides = [1, 1]} : vector<3x4xf32> to vector<1x4xf32>
    %101 = vector.broadcast %7 : vector<20x1xf32> to vector<20x4xf32>
    %102 = vector.broadcast %100 : vector<1x4xf32> to vector<20x4xf32>
    %103 = arith.mulf %101, %102 : vector<20x4xf32>
    %104 = vector.broadcast %23 : vector<20x1xf32> to vector<20x4xf32>
    %105 = arith.addf %103, %104 : vector<20x4xf32>
    %cst_52 = arith.constant dense<0.000000e+00> : vector<20x4xf32>
    %106 = tpu.matmul %15, %63, %cst_52 {dimension_numbers = #tpu.dot_dimension_numbers<[1], [0], [0], [1], [0, 0, 1, 1], [], []>} : vector<20x20xf32>, vector<20x4xf32>, vector<20x4xf32> -> vector<20x4xf32>
    %107 = arith.addf %105, %106 : vector<20x4xf32>
    %108 = arith.negf %107 : vector<20x4xf32>
    %109 = math.exp %108 : vector<20x4xf32>
    %cst_53 = arith.constant 1.000000e+00 : f32
    %110 = vector.broadcast %cst_53 : f32 to vector<20x4xf32>
    %111 = arith.addf %110, %109 : vector<20x4xf32>
    %112 = arith.divf %110, %111 : vector<20x4xf32>
    %113 = arith.mulf %90, %61 : vector<20x4xf32>
    %114 = arith.mulf %77, %99 : vector<20x4xf32>
    %115 = arith.addf %113, %114 : vector<20x4xf32>
    %116 = math.tanh %115 : vector<20x4xf32>
    %117 = arith.mulf %112, %116 : vector<20x4xf32>
    %cst_54 = arith.constant dense<0.000000e+00> : vector<1x4xf32>
    %118 = tpu.matmul %27, %117, %cst_54 {dimension_numbers = #tpu.dot_dimension_numbers<[1], [0], [0], [1], [0, 0, 1, 1], [], []>} : vector<1x20xf32>, vector<20x4xf32>, vector<1x4xf32> -> vector<1x4xf32>
    %119 = arith.addf %64, %118 : vector<1x4xf32>
    %120 = vector.extract_strided_slice %31 {offsets = [2, 0], sizes = [1, 4], strides = [1, 1]} : vector<3x4xf32> to vector<1x4xf32>
    %121 = vector.broadcast %1 : vector<20x1xf32> to vector<20x4xf32>
    %122 = vector.broadcast %120 : vector<1x4xf32> to vector<20x4xf32>
    %123 = arith.mulf %121, %122 : vector<20x4xf32>
    %124 = vector.broadcast %17 : vector<20x1xf32> to vector<20x4xf32>
    %125 = arith.addf %123, %124 : vector<20x4xf32>
    %cst_55 = arith.constant dense<0.000000e+00> : vector<20x4xf32>
    %126 = tpu.matmul %9, %117, %cst_55 {dimension_numbers = #tpu.dot_dimension_numbers<[1], [0], [0], [1], [0, 0, 1, 1], [], []>} : vector<20x20xf32>, vector<20x4xf32>, vector<20x4xf32> -> vector<20x4xf32>
    %127 = arith.addf %125, %126 : vector<20x4xf32>
    %128 = arith.negf %127 : vector<20x4xf32>
    %129 = math.exp %128 : vector<20x4xf32>
    %cst_56 = arith.constant 1.000000e+00 : f32
    %130 = vector.broadcast %cst_56 : f32 to vector<20x4xf32>
    %131 = arith.addf %130, %129 : vector<20x4xf32>
    %132 = arith.divf %130, %131 : vector<20x4xf32>
    %133 = vector.extract_strided_slice %31 {offsets = [2, 0], sizes = [1, 4], strides = [1, 1]} : vector<3x4xf32> to vector<1x4xf32>
    %134 = vector.broadcast %3 : vector<20x1xf32> to vector<20x4xf32>
    %135 = vector.broadcast %133 : vector<1x4xf32> to vector<20x4xf32>
    %136 = arith.mulf %134, %135 : vector<20x4xf32>
    %137 = vector.broadcast %19 : vector<20x1xf32> to vector<20x4xf32>
    %138 = arith.addf %136, %137 : vector<20x4xf32>
    %cst_57 = arith.constant dense<0.000000e+00> : vector<20x4xf32>
    %139 = tpu.matmul %11, %117, %cst_57 {dimension_numbers = #tpu.dot_dimension_numbers<[1], [0], [0], [1], [0, 0, 1, 1], [], []>} : vector<20x20xf32>, vector<20x4xf32>, vector<20x4xf32> -> vector<20x4xf32>
    %140 = arith.addf %138, %139 : vector<20x4xf32>
    %141 = arith.negf %140 : vector<20x4xf32>
    %142 = math.exp %141 : vector<20x4xf32>
    %cst_58 = arith.constant 1.000000e+00 : f32
    %143 = vector.broadcast %cst_58 : f32 to vector<20x4xf32>
    %144 = arith.addf %143, %142 : vector<20x4xf32>
    %145 = arith.divf %143, %144 : vector<20x4xf32>
    %146 = vector.extract_strided_slice %31 {offsets = [2, 0], sizes = [1, 4], strides = [1, 1]} : vector<3x4xf32> to vector<1x4xf32>
    %147 = vector.broadcast %5 : vector<20x1xf32> to vector<20x4xf32>
    %148 = vector.broadcast %146 : vector<1x4xf32> to vector<20x4xf32>
    %149 = arith.mulf %147, %148 : vector<20x4xf32>
    %150 = vector.broadcast %21 : vector<20x1xf32> to vector<20x4xf32>
    %151 = arith.addf %149, %150 : vector<20x4xf32>
    %cst_59 = arith.constant dense<0.000000e+00> : vector<20x4xf32>
    %152 = tpu.matmul %13, %117, %cst_59 {dimension_numbers = #tpu.dot_dimension_numbers<[1], [0], [0], [1], [0, 0, 1, 1], [], []>} : vector<20x20xf32>, vector<20x4xf32>, vector<20x4xf32> -> vector<20x4xf32>
    %153 = arith.addf %151, %152 : vector<20x4xf32>
    %154 = math.tanh %153 : vector<20x4xf32>
    %155 = vector.extract_strided_slice %31 {offsets = [2, 0], sizes = [1, 4], strides = [1, 1]} : vector<3x4xf32> to vector<1x4xf32>
    %156 = vector.broadcast %7 : vector<20x1xf32> to vector<20x4xf32>
    %157 = vector.broadcast %155 : vector<1x4xf32> to vector<20x4xf32>
    %158 = arith.mulf %156, %157 : vector<20x4xf32>
    %159 = vector.broadcast %23 : vector<20x1xf32> to vector<20x4xf32>
    %160 = arith.addf %158, %159 : vector<20x4xf32>
    %cst_60 = arith.constant dense<0.000000e+00> : vector<20x4xf32>
    %161 = tpu.matmul %15, %117, %cst_60 {dimension_numbers = #tpu.dot_dimension_numbers<[1], [0], [0], [1], [0, 0, 1, 1], [], []>} : vector<20x20xf32>, vector<20x4xf32>, vector<20x4xf32> -> vector<20x4xf32>
    %162 = arith.addf %160, %161 : vector<20x4xf32>
    %163 = arith.negf %162 : vector<20x4xf32>
    %164 = math.exp %163 : vector<20x4xf32>
    %cst_61 = arith.constant 1.000000e+00 : f32
    %165 = vector.broadcast %cst_61 : f32 to vector<20x4xf32>
    %166 = arith.addf %165, %164 : vector<20x4xf32>
    %167 = arith.divf %165, %166 : vector<20x4xf32>
    %168 = arith.mulf %145, %115 : vector<20x4xf32>
    %169 = arith.mulf %132, %154 : vector<20x4xf32>
    %170 = arith.addf %168, %169 : vector<20x4xf32>
    %171 = math.tanh %170 : vector<20x4xf32>
    %172 = arith.mulf %167, %171 : vector<20x4xf32>
    %cst_62 = arith.constant dense<0.000000e+00> : vector<1x4xf32>
    %173 = tpu.matmul %29, %172, %cst_62 {dimension_numbers = #tpu.dot_dimension_numbers<[1], [0], [0], [1], [0, 0, 1, 1], [], []>} : vector<1x20xf32>, vector<20x4xf32>, vector<1x4xf32> -> vector<1x4xf32>
    %174 = arith.addf %119, %173 : vector<1x4xf32>
    %175 = vector.broadcast %30 : vector<1x1xf32> to vector<1x4xf32>
    %176 = arith.addf %174, %175 : vector<1x4xf32>
    %c0_63 = arith.constant 0 : index
    %c0_64 = arith.constant 0 : index
    %177 = vector.load %arg7[%c0_63, %c0_64] : memref<1x4xf32, #tpu.memory_space<vmem>>, vector<1x4xf32>
    tpu.vector_store %arg7[%c0_63, %c0_64], %176 {strides = array<i32>} : memref<1x4xf32, #tpu.memory_space<vmem>>, vector<1x4xf32>,
    return
  }
  func.func @transform_0(%arg0: i32) -> (i32, i32) {
    %c0_i32 = arith.constant 0 : i32
    %c0_i32_0 = arith.constant 0 : i32
    return %c0_i32, %arg0 : i32, i32
  }
  func.func @transform_1(%arg0: i32) -> (i32, i32, i32) {
    %c0_i32 = arith.constant 0 : i32
    %c0_i32_0 = arith.constant 0 : i32
    %c0_i32_1 = arith.constant 0 : i32
    %c0_i32_2 = arith.constant 0 : i32
    return %c0_i32, %c0_i32_0, %c0_i32_1 : i32, i32, i32
  }
  func.func @transform_2(%arg0: i32) -> (i32, i32, i32) {
    %c0_i32 = arith.constant 0 : i32
    %c0_i32_0 = arith.constant 0 : i32
    %c0_i32_1 = arith.constant 0 : i32
    %c0_i32_2 = arith.constant 0 : i32
    return %c0_i32, %c0_i32_0, %c0_i32_1 : i32, i32, i32
  }
  func.func @transform_3(%arg0: i32) -> (i32, i32, i32) {
    %c0_i32 = arith.constant 0 : i32
    %c0_i32_0 = arith.constant 0 : i32
    %c0_i32_1 = arith.constant 0 : i32
    %c0_i32_2 = arith.constant 0 : i32
    return %c0_i32, %c0_i32_0, %c0_i32_1 : i32, i32, i32
  }
  func.func @transform_4(%arg0: i32) -> (i32, i32, i32) {
    %c0_i32 = arith.constant 0 : i32
    %c0_i32_0 = arith.constant 0 : i32
    %c0_i32_1 = arith.constant 0 : i32
    %c0_i32_2 = arith.constant 0 : i32
    return %c0_i32, %c0_i32_0, %c0_i32_1 : i32, i32, i32
  }
  func.func @transform_5(%arg0: i32) -> (i32, i32) {
    %c0_i32 = arith.constant 0 : i32
    %c0_i32_0 = arith.constant 0 : i32
    %c0_i32_1 = arith.constant 0 : i32
    return %c0_i32, %c0_i32_0 : i32, i32
  }
  func.func @transform_6(%arg0: i32) -> (i32, i32) {
    %c0_i32 = arith.constant 0 : i32
    %c0_i32_0 = arith.constant 0 : i32
    return %c0_i32, %arg0 : i32, i32
  }
}

</mosaic_0001>

<bundles_post_ra>
// kernel: tpu_custom_call.1
= control target key start
LH: loop header
LB: loop body
LE: loop exit
PB: predicated region body
PF: predicated region fallthrough
CT: control target
= control target key end

     0   :  { %s2143_s0 = inlined_call_operand.vmem [shape: f32[3,4], index: 0, kind: input, shape index: {}]   ;;  %s2144_s1 = inlined_call_operand.vmem [shape: f32[4,20,1], index: 1, kind: input, shape index: {}]   ;;  %s2145_s2 = inlined_call_operand.vmem [shape: f32[4,20,20], index: 2, kind: input, shape index: {}]   ;;  %s2146_s3 = inlined_call_operand.vmem [shape: f32[4,20,1], index: 3, kind: input, shape index: {}]   ;;  %s2147_s4 = inlined_call_operand.vmem [shape: f32[3,1,20], index: 4, kind: input, shape index: {}]   ;;  %s2148_s5 = inlined_call_operand.<no memory space> [shape: f32[1,1], index: 5, kind: input, shape index: {}]   ;;  %s2149_s6 = inlined_call_operand.hbm [shape: f32[1,4], index: 6, kind: output, shape index: {}]  }
   0x1   :  { %v11_v0 = vstv %s2148_s5 }
   0x2   :  { %12 = vst [vmem:[#allocation2] sm:$0x1] %v11_v0 }
   0x3   :  { %v58_v1 = vld [vmem:[%s2146_s3 + $0x10] sm:$0xf]  ;;  %v57_v2 = vld [vmem:[%s2146_s3 + $0x8] sm:$0xff]  ;;  %v1399_v4 = vmov 0  }
   0x4   :  { %v28_v3 = vld [vmem:[%s2144_s1 + $0x10] sm:$0xf]  ;;  %1240 = vset.pattern.permute.xlu2 %v1399_v4  ;;  %1239 = vset.pattern.permute.xlu1 %v1399_v4 }
   0x5   :  { %1238 = vset.pattern.permute.xlu0 %v1399_v4  ;;  %109 = vperm.xlu1 %1239, %v58_v1  }
   0x6   :  { %104 = vperm.xlu2 %1240, %v57_v2   ;;  %90 = vperm.xlu0 %1238, %v28_v3  }
   0x7   :  { %13 = vsyncpa [#allocation4], 0  ;;  %v26_v5 = vld [vmem:[%s2144_s1] sm:$0xff]  ;;  %v27_v7 = vld [vmem:[%s2144_s1 + $0x8] sm:$0xff]  ;;  %s1136_s25 = sshll.u32 %s2149_s6, 4  ;;  %s1137_s25 = int_to_ptr.hbm [resolvable:$true] %s1136_s25 }
   0x8   :  { %v56_v6 = vld [vmem:[%s2146_s3] sm:$0xff]  ;;  %v1152_v8 = vld [vmem:[%s2144_s1 + $0x50] sm:$0xff]  ;;  %v1171_v9 = vld [vmem:[%s2146_s3 + $0x58] sm:$0xf] }
   0x9   :  { %v1153_v10 = vld [vmem:[%s2144_s1 + $0x58] sm:$0xf]  ;;  %v1170_v11 = vld [vmem:[%s2146_s3 + $0x50] sm:$0xff]  ;;  %v1169_v12 = vld [vmem:[%s2146_s3 + $0x48] sm:$0xff] }
   0xa   :  { %v1151_v13 = vld [vmem:[%s2144_s1 + $0x48] sm:$0xff]  ;;  %v1149_v14 = vld [vmem:[%s2144_s1 + $0x38] sm:$0xff]  ;;  %v1168_v15 = vld [vmem:[%s2146_s3 + $0x40] sm:$0xf] }
   0xb   :  { %v1150_v16 = vld [vmem:[%s2144_s1 + $0x40] sm:$0xf]  ;;  %v1167_v17 = vld [vmem:[%s2146_s3 + $0x38] sm:$0xff]  ;;  %v1166_v18 = vld [vmem:[%s2146_s3 + $0x30] sm:$0xff] }
   0xc   :  { %v1148_v19 = vld [vmem:[%s2144_s1 + $0x30] sm:$0xff]  ;;  %v1146_v20 = vld [vmem:[%s2144_s1 + $0x20] sm:$0xff]  ;;  %v1165_v21 = vld [vmem:[%s2146_s3 + $0x28] sm:$0xf] }
   0xd   :  { %80 = vperm.xlu1 %1239, %v26_v5   ;;  %v1147_v22 = vld [vmem:[%s2144_s1 + $0x28] sm:$0xf]  ;;  %v1164_v23 = vld [vmem:[%s2146_s3 + $0x20] sm:$0xff]  ;;  %v1163_v24 = vld [vmem:[%s2146_s3 + $0x18] sm:$0xff] }
   0xe   :  { %99 = vperm.xlu2 %1240, %v56_v6   ;;  %85 = vperm.xlu0 %1238, %v27_v7   ;;  %v1145_v25 = vld [vmem:[%s2144_s1 + $0x18] sm:$0xff]  ;;  %v76_v26 = vld [vmem:[#allocation2] sm:$0x1]  ;;  %s1400_s1 = smov [#allocation3]  }
   0xf   :  { %v77_v28 = vld [vmem:[%s2143_s0] sm:$0x7]  ;;  %s1134_s3 = sshll.u32 %s1400_s1, 4  ;;  %s1135_s3 = int_to_ptr.vmem [resolvable:$true] %s1134_s3 }
  0x10   :  { %v1514_v29 = vperm.slane %v77_v28, 0  ;;  %v1516_v30 = vperm.slane %v77_v28, 1  ;;  %v1518_v31 = vperm.slane %v77_v28, 2 }
  0x15   :  { %218 = vperm.xlu1 %1239, %v1152_v8  }
  0x16   :  { %241 = vperm.xlu2 %1240, %v1171_v9   ;;  %223 = vperm.xlu0 %1238, %v1153_v10  }
  0x1d   :  { %236 = vperm.xlu1 %1239, %v1170_v11  }
  0x1e   :  { %231 = vperm.xlu2 %1240, %v1169_v12   ;;  %213 = vperm.xlu0 %1238, %v1151_v13  }
  0x25   :  { %179 = vperm.xlu1 %1239, %v1149_v14  }
  0x26   :  { %202 = vperm.xlu2 %1240, %v1168_v15   ;;  %184 = vperm.xlu0 %1238, %v1150_v16  }
  0x2d   :  { %197 = vperm.xlu1 %1239, %v1167_v17  }
  0x2e   :  { %192 = vperm.xlu2 %1240, %v1166_v18   ;;  %174 = vperm.xlu0 %1238, %v1148_v19  }
  0x35   :  { %427 = vperm.xlu1 %1239, %v1146_v20  }
  0x36   :  { %450 = vperm.xlu2 %1240, %v1165_v21   ;;  %432 = vperm.xlu0 %1238, %v1147_v22  }
  0x3d   :  { %445 = vperm.xlu1 %1239, %v1164_v23  }
  0x3e   :  { %440 = vperm.xlu2 %1240, %v1163_v24   ;;  %422 = vperm.xlu0 %1238, %v1145_v25  }
  0x46   :  { %1122 = vperm.xlu0 %1238, %v76_v26  }
  0x60   :  { %v105_v27 = vpop.permute.xlu2 %104 }
  0x68   :  { %v100_v32 = vpop.permute.xlu2 %99 }
  0x70   :  { %v242_v43 = vpop.permute.xlu2 %241 }
  0x77   :  { %v110_v33 = vpop.permute.xlu1 %109 }
  0x78   :  { %v91_v34 = vpop.permute.xlu0 %90  ;;  %v232_v4 = vpop.permute.xlu2 %231 }
  0x79   :  { %v96_v35 = vmul.f32 %v1514_v29, %v91_v34  ;;  %v316_v36 = vmul.f32 %v1516_v30, %v91_v34  ;;  %v766_v37 = vmul.f32 %v1518_v31, %v91_v34 }
  0x7b   :  { %v114_v38 = vadd.f32 %v110_v33, %v96_v35  ;;  %v1523_v39 = vadd.f32 %v316_v36, %v110_v33  ;;  %v1525_v40 = vadd.f32 %v766_v37, %v110_v33 }
  0x7d   :  { %v1176_v41 = vmul.f32 -1.442695, %v114_v38 }
  0x7f   :  { %1241 = vpow2.f32 %v1176_v41  ;;  %v81_v42 = vpop.permute.xlu1 %80 }
  0x80   :  { %v86_v44 = vpop.permute.xlu0 %85  ;;  %v94_v45 = vmul.f32 %v1514_v29, %v81_v42  ;;  %v314_v46 = vmul.f32 %v1516_v30, %v81_v42  ;;  %v764_v47 = vmul.f32 %v1518_v31, %v81_v42  ;;  %v1567_v25 = vpop.permute.xlu2 %202 }
  0x81   :  { %v95_v48 = vmul.f32 %v1514_v29, %v86_v44  ;;  %v315_v49 = vmul.f32 %v1516_v30, %v86_v44  ;;  %v765_v50 = vmul.f32 %v1518_v31, %v86_v44 }
  0x82   :  { %v112_v51 = vadd.f32 %v100_v32, %v94_v45  ;;  %v1533_v52 = vadd.f32 %v314_v46, %v100_v32  ;;  %v1535_v53 = vadd.f32 %v764_v47, %v100_v32 }
  0x83   :  { %v113_v54 = vadd.f32 %v105_v27, %v95_v48  ;;  %v1537_v55 = vadd.f32 %v315_v49, %v105_v27  ;;  %v1539_v56 = vadd.f32 %v765_v50, %v105_v27 }
  0x84   :  { %v1174_v57 = vmul.f32 -1.442695, %v112_v51 }
  0x85   :  { %v1242_v58 = vpop.eup %1241  ;;  %v1175_v59 = vmul.f32 -1.442695, %v113_v54 }
  0x86   :  { %v1541_v60 = vadd.f32 1.0, %v1242_v58  ;;  %1243 = vpow2.f32 %v1174_v57 }
  0x87   :  { %1245 = vpow2.f32 %v1175_v59  ;;  %v219_v61 = vpop.permute.xlu1 %218 }
  0x88   :  { %1247 = vrcp.f32 %v1541_v60  ;;  %v224_v62 = vpop.permute.xlu0 %223  ;;  %v599_v63 = vmul.f32 %v1516_v30, %v219_v61  ;;  %v987_v0 = vmul.f32 %v1518_v31, %v219_v61  ;;  %v227_v14 = vmul.f32 %v219_v61, %v1514_v29 }
  0x89   :  { %v228_v1 = vmul.f32 %v224_v62, %v1514_v29  ;;  %v600_v2 = vmul.f32 %v1516_v30, %v224_v62  ;;  %v988_v3 = vmul.f32 %v1518_v31, %v224_v62  ;;  %v166_v33 = vand.u32 2147483647, %v1541_v60 }
  0x8a   :  { %vm162_vm0 = vweird.f32 %v1541_v60  ;;  %v168_v46 = vand.u32 2147483648, %v1541_v60 }
  0x8b   :  { %v246_v5 = vadd.f32 %v242_v43, %v228_v1  ;;  %v1549_v6 = vadd.f32 %v600_v2, %v242_v43  ;;  %v1551_v7 = vadd.f32 %v988_v3, %v242_v43  ;;  %vm1592_vm1 = vcmp.eq.f32.partialorder %v166_v33, 8.507059e+37 }
  0x8c   :  { %v1244_v8 = vpop.eup %1243  ;;  %v169_v2 = vor.u32 1.1754944e-38, %v168_v46 }
  0x8d   :  { %v1246_v9 = vpop.eup %1245  ;;  %v1553_v10 = vadd.f32 1.0, %v1244_v8  ;;  %v1179_v11 = vmul.f32 -1.442695, %v246_v5 }
  0x8e   :  { %v1555_v12 = vpop.eup %1247  ;;  %v1557_v13 = vadd.f32 1.0, %v1246_v9 }
  0x8f   :  { %v158_v15 = vmul.f32 %v1555_v12, %v1541_v60  ;;  %1249 = vrcp.f32 %v1553_v10  ;;  %v237_v16 = vpop.permute.xlu1 %236  ;;  %v138_v48 = vand.u32 2147483648, %v1553_v10  ;;  %vm163_vm2 = vweird.f32 %v1555_v12 }
  0x90   :  { %1251 = vrcp.f32 %v1557_v13  ;;  %v214_v17 = vpop.permute.xlu0 %213  ;;  %v245_v18 = vadd.f32 %v237_v16, %v227_v14  ;;  %v1571_v27 = vadd.f32 %v599_v63, %v237_v16  ;;  %v1582_v37 = vadd.f32 %v987_v0, %v237_v16  ;;  %vm1628_vm5 = vmor %vm162_vm0, %vm163_vm2 }
  0x91   :  { %1253 = vpow2.f32 %v1179_v11  ;;  %v226_v19 = vmul.f32 %v214_v17, %v1514_v29  ;;  %v598_v20 = vmul.f32 %v1516_v30, %v214_v17  ;;  %v986_v21 = vmul.f32 %v1518_v31, %v214_v17  ;;  %v193_v11 = vpop.permute.xlu2 %192 }
  0x92   :  { %v1178_v22 = vmul.f32 -1.442695, %v245_v18  ;;  %v159_v23 = vsub.f32 1.0, %v158_v15  ;;  %v151_v1 = vand.u32 2147483647, %v1557_v13  ;;  %vm132_vm3 = vweird.f32 %v1553_v10 }
  0x93   :  { %v244_v24 = vadd.f32 %v232_v4, %v226_v19  ;;  %v1569_v26 = vadd.f32 %v598_v20, %v232_v4  ;;  %v1576_v34 = vadd.f32 %v986_v21, %v232_v4  ;;  %v136_v4 = vand.u32 2147483647, %v1553_v10  ;;  %v1832_v19 = vld [vmem:[%s2145_s2 + $0x38] sm:$0xff] }
  0x94   :  { %1255 = vpow2.f32 %v1178_v22  ;;  %v160_v42 = vmul.f32 %v1555_v12, %v159_v23  ;;  %v1619_v9 = vor.u32 1.1754944e-38, %v138_v48  ;;  %vm147_vm4 = vweird.f32 %v1557_v13 }
  0x95   :  { %v1573_v28 = vpop.eup %1249  ;;  %v1177_v32 = vmul.f32 -1.442695, %v244_v24  ;;  %v153_v17 = vand.u32 2147483648, %v1557_v13  ;;  %vm1639_vm8 = vcmp.eq.f32.partialorder %v151_v1, 8.507059e+37  ;;  %vm1647_vm9 = vcmp.eq.f32.partialorder %v136_v4, 8.507059e+37 }
  0x96   :  { %v1578_v35 = vpop.eup %1251  ;;  %v128_v36 = vmul.f32 %v1573_v28, %v1553_v10  ;;  %v161_v63 = vadd.f32 %v1555_v12, %v160_v42  ;;  %vm133_vm6 = vweird.f32 %v1573_v28  ;;  %vm330_vm2 = vcmask 1043456  }
  0x97   :  { %v1254_v38 = vpop.eup %1253  ;;  %v143_v41 = vmul.f32 %v1578_v35, %v1557_v13  ;;  %1257 = vpow2.f32 %v1177_v32  ;;  %v180_v43 = vpop.permute.xlu1 %179  ;;  %vm148_vm7 = vweird.f32 %v1578_v35  ;;  %v154_v42 = vor.u32 1.1754944e-38, %v153_v17  ;;  %vm1666_vm11 = vmor %vm132_vm3, %vm133_vm6 }
  0x98   :  { %v129_v44 = vsub.f32 1.0, %v128_v36  ;;  %v1588_v45 = vadd.f32 1.0, %v1254_v38  ;;  %v185_v47 = vpop.permute.xlu0 %184  ;;  %v552_v59 = vmul.f32 %v1516_v30, %v180_v43  ;;  %v1607_v61 = vmul.f32 %v1518_v31, %v180_v43  ;;  %vm1681_vm12 = vmor %vm147_vm4, %vm148_vm7 }
  0x99   :  { %v144_v49 = vsub.f32 1.0, %v143_v41  ;;  %v189_v51 = vmul.f32 %v185_v47, %v1514_v29  ;;  %v1598_v54 = vmul.f32 %v1516_v30, %v185_v47  ;;  %v1601_v57 = vmul.f32 %v1518_v31, %v185_v47  ;;  %v1711_v15 = vpop.permute.xlu2 %450 }
  0x9a   :  { %v1256_v58 = vpop.eup %1255  ;;  %1259 = vrcp.f32 %v1588_v45  ;;  %v130_v3 = vmul.f32 %v1573_v28, %v129_v44  ;;  %v188_v16 = vmul.f32 %v180_v43, %v1514_v29  ;;  %v165_v18 = vsel %vm1628_vm5, %v1555_v12, %v161_v63 }
  0x9b   :  { %v1609_v62 = vadd.f32 1.0, %v1256_v58  ;;  %v207_v0 = vadd.f32 %v1567_v25, %v189_v51  ;;  %v145_v5 = vmul.f32 %v1578_v35, %v144_v49  ;;  %v170_v41 = vsel %vm1592_vm1, %v169_v2, %v165_v18 }
  0x9c   :  { %v131_v22 = vadd.f32 %v1573_v28, %v130_v3  ;;  %vm294_vm10 = vweird.f32 %v1588_v45  ;;  %v298_v47 = vand.u32 2147483647, %v1588_v45  ;;  %v300_v48 = vand.u32 2147483648, %v1588_v45 }
  0x9d   :  { %v1258_v8 = vpop.eup %1257  ;;  %1261 = vrcp.f32 %v1609_v62  ;;  %v146_v12 = vadd.f32 %v1578_v35, %v145_v5  ;;  %v1700_v3 = vadd.f32 %v1598_v54, %v1567_v25  ;;  %vm279_vm14 = vweird.f32 %v1609_v62 }
  0x9e   :  { %v1622_v14 = vadd.f32 1.0, %v1258_v8  ;;  %1263 = vtanh.f32 %v207_v0  ;;  %v135_v51 = vsel %vm1666_vm11, %v1573_v28, %v131_v22  ;;  %vm299_vm1 = vcmp.eq.f32.partialorder %v298_v47, 8.507059e+37 }
  0x9f   :  { %v198_v60 = vpop.permute.xlu1 %197  ;;  %v150_v1 = vsel %vm1681_vm12, %v1578_v35, %v146_v12  ;;  %v140_v22 = vsel %vm1647_vm9, %v1619_v9, %v135_v51  ;;  %v1745_v9 = vadd.f32 %v1601_v57, %v1567_v25  ;;  %vm320_vm9 = vcmask 162816  }
  0xa0   :  { %v1643_v20 = vpop.eup %1259  ;;  %1265 = vrcp.f32 %v1622_v14  ;;  %v175_v21 = vpop.permute.xlu0 %174  ;;  %v206_v24 = vadd.f32 %v198_v60, %v188_v16  ;;  %v1687_v63 = vadd.f32 %v552_v59, %v198_v60  ;;  %v155_v54 = vsel %vm1639_vm8, %v154_v42, %v150_v1 }
  0xa1   :  { %v290_v32 = vmul.f32 %v1643_v20, %v1588_v45  ;;  %v187_v33 = vmul.f32 %v175_v21, %v1514_v29  ;;  %v551_v36 = vmul.f32 %v1516_v30, %v175_v21  ;;  %v948_v38 = vmul.f32 %v1518_v31, %v175_v21 }
  0xa2   :  { %1267 = vtanh.f32 %v206_v24  ;;  %vm295_vm13 = vweird.f32 %v1643_v20  ;;  %v1721_v18 = vadd.f32 %v1607_v61, %v198_v60  ;;  %v301_v45 = vor.u32 1.1754944e-38, %v300_v48 }
  0xa3   :  { %v1660_v43 = vpop.eup %1261  ;;  %v291_v44 = vsub.f32 1.0, %v290_v32  ;;  %v205_v46 = vadd.f32 %v193_v11, %v187_v33  ;;  %v1685_v58 = vadd.f32 %v551_v36, %v193_v11  ;;  %v1702_v59 = vadd.f32 %v948_v38, %v193_v11  ;;  %vm1734_vm15 = vmor %vm294_vm10, %vm295_vm13 }
  0xa4   :  { %v1264_v49 = vpop.eup %1263  ;;  %v275_v50 = vmul.f32 %v1660_v43, %v1609_v62  ;;  %vm280_vm0 = vweird.f32 %v1660_v43  ;;  %v285_v32 = vand.u32 2147483648, %v1609_v62  ;;  %vm264_vm5 = vweird.f32 %v1622_v14 }
  0xa5   :  { %v1689_v0 = vmul.f32 %v1264_v49, %v170_v41  ;;  %1269 = vtanh.f32 %v205_v46  ;;  %v292_v28 = vmul.f32 %v1643_v20, %v291_v44  ;;  %vm1758_vm3 = vmor %vm279_vm14, %vm280_vm0  ;;  %v270_v46 = vand.u32 2147483648, %v1622_v14 }
  0xa6   :  { %v1695_v2 = vpop.eup %1265  ;;  %v276_v13 = vsub.f32 1.0, %v275_v50  ;;  %v268_v48 = vand.u32 2147483647, %v1622_v14 }
  0xa7   :  { %v260_v4 = vmul.f32 %v1695_v2, %v1622_v14  ;;  %1271 = vtanh.f32 %v1689_v0  ;;  %v1707_v5 = vpop.permute.xlu1 %427  ;;  %v293_v35 = vadd.f32 %v1643_v20, %v292_v28  ;;  %vm265_vm4 = vweird.f32 %v1695_v2  ;;  %v441_v28 = vpop.permute.xlu2 %440 }
  0xa8   :  { %v1268_v8 = vpop.eup %1267  ;;  %v277_v16 = vmul.f32 %v1660_v43, %v276_v13  ;;  %v1716_v11 = vpop.permute.xlu0 %432  ;;  %v857_v17 = vmul.f32 %v1518_v31, %v1707_v5  ;;  %vm1778_vm7 = vmor %vm264_vm5, %vm265_vm4  ;;  %vm269_vm8 = vcmp.eq.f32.partialorder %v268_v48, 8.507059e+37 }
  0xa9   :  { %v261_v21 = vsub.f32 1.0, %v260_v4  ;;  %v1726_v12 = vmul.f32 %v1268_v8, %v155_v54  ;;  %v858_v24 = vmul.f32 %v1518_v31, %v1716_v11  ;;  %v297_v61 = vsel %vm1734_vm15, %v1643_v20, %v293_v35 }
  0xaa   :  { %v278_v60 = vadd.f32 %v1660_v43, %v277_v16  ;;  %v283_v20 = vand.u32 2147483647, %v1609_v62  ;;  %v302_v42 = vsel %vm299_vm1, %v301_v45, %v297_v61  ;;  %v286_v62 = vor.u32 1.1754944e-38, %v285_v32  ;;  %v1837_v61 = vld [vmem:[%s2145_s2 + $0x50] sm:$0xff]  ;;  %v1860_v45 = vld [vmem:[%s2145_s2 + $0x40] sm:$0xf] }
  0xab   :  { %v1270_v23 = vpop.eup %1269  ;;  %1273 = vtanh.f32 %v1726_v12  ;;  %v262_v33 = vmul.f32 %v1695_v2, %v261_v21  ;;  %v1754_v38 = vadd.f32 %v858_v24, %v1711_v15  ;;  %v271_v4 = vor.u32 1.1754944e-38, %v270_v46  ;;  %v1808_v21 = vld [vmem:[%s2145_s2 + $0x48] sm:$0xff]  ;;  %v1827_v24 = vld [vmem:[%s2145_s2 + $0x20] sm:$0xff]  ;;  %v1865_v32 = vld [vmem:[%s2145_s2 + $0x58] sm:$0xf] }
  0xac   :  { %v1750_v36 = vmul.f32 %v1270_v23, %v140_v22  ;;  %v282_v29 = vsel %vm1758_vm3, %v1660_v43, %v278_v60  ;;  %vm284_vm6 = vcmp.eq.f32.partialorder %v283_v20, 8.507059e+37  ;;  %v1822_v22 = vld [vmem:[%s2145_s2 + $0x8] sm:$0xff]  ;;  %v1850_v60 = vld [vmem:[%s2145_s2 + $0x10] sm:$0xf]  ;;  %v436_v46 = vmul.f32 %v1707_v5, %v1516_v30 }
  0xad   :  { %v1272_v41 = vpop.eup %1271  ;;  %v263_v57 = vadd.f32 %v1695_v2, %v262_v33  ;;  %v287_v10 = vsel %vm284_vm6, %v286_v62, %v282_v29  ;;  %v1855_v23 = vld [vmem:[%s2145_s2 + $0x28] sm:$0xf]  ;;  %v437_v5 = vmul.f32 %v1716_v11, %v1516_v30 }
  0xae   :  { %1275 = vtanh.f32 %v1750_v36  ;;  %v312_v44 = vmul.f32 %v1272_v41, %v302_v42 }
  0xaf   :  { %v1769_v47 = vpop.permute.xlu1 %445  ;;  %v267_v1 = vsel %vm1778_vm7, %v1695_v2, %v263_v57  ;;  %v1798_v2 = vld [vmem:[%s2145_s2 + $0x18] sm:$0xff] }
  0xb0   :  { %1180 = vmatpush.msk.msra.mxu0 %vm330_vm2, %v312_v44  ;;  %1187 = vmatpush.msk.msra.mxu1 %vm330_vm2, %v312_v44  ;;  %v423_v49 = vpop.permute.xlu0 %422  ;;  %v1776_v50 = vadd.f32 %v857_v17, %v1769_v47  ;;  %v272_v16 = vsel %vm269_vm8, %v271_v4, %v267_v1  ;;  %v1803_v17 = vld [vmem:[%s2145_s2 + $0x30] sm:$0xff]  ;;  %v454_v62 = vadd.f32 %v1769_v47, %v436_v46 }
  0xb1   :  { %v1274_v51 = vpop.eup %1273  ;;  %1194 = vmatpush.msk.msra.mxu2 %vm330_vm2, %v312_v44  ;;  %1198 = vmatpush.msk.msra.mxu3 %vm330_vm2, %v312_v44  ;;  %v856_v14 = vmul.f32 %v1518_v31, %v423_v49  ;;  %v1793_v31 = vld [vmem:[%s2145_s2] sm:$0xff]  ;;  %v435_v33 = vmul.f32 %v423_v49, %v1516_v30 }
  0xb2   :  { %v311_v13 = vmul.f32 %v1274_v51, %v287_v10 }
  0xb3   :  { %v1788_v35 = vadd.f32 %v856_v14, %v441_v28  ;;  %v453_v20 = vadd.f32 %v441_v28, %v435_v33 }
  0xb4   :  { %v1276_v8 = vpop.eup %1275  ;;  %348 = vmatpush.msra.mxu0 %v311_v13  ;;  %479 = vmatpush.msra.mxu1 %v311_v13 }
  0xb5   :  { %580 = vmatpush.msra.mxu2 %v311_v13  ;;  %627 = vmatpush.msra.mxu3 %v311_v13  ;;  %v310_v54 = vmul.f32 %v1276_v8, %v272_v16 }
  0xb7   :  { %349 = vmatpush.msra.mxu0 %v310_v54  ;;  %480 = vmatpush.msra.mxu1 %v310_v54 }
  0xb8   :  { %581 = vmatpush.msra.mxu2 %v310_v54  ;;  %628 = vmatpush.msra.mxu3 %v310_v54 }
  0xb9   :  { %1181 = vmatmul.msk.f32.vlgmr.msra.gmra.mxu0 %vm320_vm9, %v1793_v31  ;;  %1188 = vmatmul.msk.f32.vlgmr.msra.gmra.mxu1 %vm320_vm9, %v1798_v2 }
  0xba   :  { %1195 = vmatmul.msk.f32.vlgmr.msra.gmra.mxu2 %vm320_vm9, %v1803_v17  ;;  %1199 = vmatmul.msk.f32.vlgmr.msra.gmra.mxu3 %vm320_vm9, %v1808_v21 }
  0xbb   :  { %1207 = vmatpush.msk.msrb.mxu1 %vm330_vm2, %v312_v44 }
  0xbd   :  { %757 = vmatpush.msrb.mxu1 %v311_v13 }
  0xbf   :  { %758 = vmatpush.msrb.mxu1 %v310_v54 }
  0xc1   :  { %1182 = vmatmul.msk.f32.gmra.mxu0 %vm320_vm9, %v1822_v22  ;;  %1189 = vmatmul.msk.f32.gmra.mxu1 %vm320_vm9, %v1827_v24 }
  0xc2   :  { %1196 = vmatmul.msk.f32.gmra.mxu2 %vm320_vm9, %v1832_v19  ;;  %1200 = vmatmul.msk.f32.gmra.mxu3 %vm320_vm9, %v1837_v61 }
  0xc9   :  { %1183 = vmatmul.msk.f32.gmra.mxu0 %vm320_vm9, %v1850_v60  ;;  %1190 = vmatmul.msk.f32.gmra.mxu1 %vm320_vm9, %v1855_v23 }
  0xca   :  { %1197 = vmatmul.msk.f32.gmra.mxu2 %vm320_vm9, %v1860_v45  ;;  %1201 = vmatmul.msk.f32.gmra.mxu3 %vm320_vm9, %v1865_v32 }
 0x136   :  { %v351_v41 = vpop.f32.mrf.mxu0  ;;  %v482_v42 = vpop.f32.mrf.mxu1 }
 0x137   :  { %v360_v25 = vadd.f32 %v351_v41, %v1533_v52  ;;  %v491_v57 = vadd.f32 %v482_v42, %v453_v20  ;;  %v455_v42 = vadd.f32 %v1711_v15, %v437_v5 }
 0x139   :  { %v1184_v44 = vmul.f32 -1.442695, %v360_v25  ;;  %v1191_v29 = vmul.f32 -1.442695, %v491_v57 }
 0x13b   :  { %1277 = vpow2.f32 %v1184_v44 }
 0x13c   :  { %1279 = vpow2.f32 %v1191_v29 }
 0x13d   :  { %v630_v48 = vpop.f32.mrf.mxu3  ;;  %v583_v8 = vpop.f32.mrf.mxu2 }
 0x13e   :  { %v354_v43 = vpop.f32.mrf.mxu0  ;;  %v485_v51 = vpop.f32.mrf.mxu1  ;;  %v592_v16 = vadd.f32 %v583_v8, %v1685_v58 }
 0x13f   :  { %v361_v49 = vadd.f32 %v354_v43, %v1537_v55  ;;  %v492_v14 = vadd.f32 %v485_v51, %v454_v62  ;;  %v639_v55 = vadd.f32 %v630_v48, %v1569_v26 }
 0x141   :  { %v1278_v10 = vpop.eup %1277  ;;  %v1185_v1 = vmul.f32 -1.442695, %v361_v49  ;;  %v1192_v13 = vmul.f32 -1.442695, %v492_v14  ;;  %v1202_v62 = vmul.f32 -1.442695, %v639_v55 }
 0x142   :  { %v1280_v28 = vpop.eup %1279  ;;  %v372_v52 = vadd.f32 1.0, %v1278_v10 }
 0x143   :  { %v503_v4 = vadd.f32 1.0, %v1280_v28  ;;  %1281 = vpow2.f32 %v1185_v1 }
 0x144   :  { %1283 = vrcp.f32 %v372_v52  ;;  %v384_v48 = vand.u32 2147483647, %v372_v52  ;;  %v386_v49 = vand.u32 2147483648, %v372_v52  ;;  %vm380_vm12 = vweird.f32 %v372_v52 }
 0x145   :  { %1285 = vrcp.f32 %v503_v4  ;;  %v633_v54 = vpop.f32.mrf.mxu3  ;;  %v517_v51 = vand.u32 2147483648, %v503_v4  ;;  %vm511_vm13 = vweird.f32 %v503_v4 }
 0x146   :  { %1287 = vpow2.f32 %v1192_v13  ;;  %v357_v47 = vpop.f32.mrf.mxu0  ;;  %v488_v33 = vpop.f32.mrf.mxu1  ;;  %v640_v44 = vadd.f32 %v633_v54, %v1571_v27  ;;  %v515_v13 = vand.u32 2147483647, %v503_v4  ;;  %vm385_vm14 = vcmp.eq.f32.partialorder %v384_v48, 8.507059e+37 }
 0x147   :  { %v362_v41 = vadd.f32 %v357_v47, %v1523_v39  ;;  %1289 = vtanh.f32 %v592_v16  ;;  %v493_v29 = vadd.f32 %v488_v33, %v455_v42  ;;  %v586_v27 = vpop.f32.mrf.mxu2  ;;  %v387_v16 = vor.u32 1.1754944e-38, %v386_v49 }
 0x148   :  { %v1203_v14 = vmul.f32 -1.442695, %v640_v44  ;;  %v593_v55 = vadd.f32 %v586_v27, %v1687_v63  ;;  %v518_v33 = vor.u32 1.1754944e-38, %v517_v51  ;;  %vm516_vm1 = vcmp.eq.f32.partialorder %v515_v13, 8.507059e+37  ;;  %v71_v63 = vld [vmem:[%s2147_s4] sm:$0x1] }
 0x149   :  { %v1282_v20 = vpop.eup %1281  ;;  %v1186_v39 = vmul.f32 -1.442695, %v362_v41  ;;  %v1193_v1 = vmul.f32 -1.442695, %v493_v29  ;;  %1208 = vmatmul.msk.f32.vlgmr.msrb.gmra.mxu1 %vm320_vm9, %v71_v63 }
 0x14a   :  { %v1284_v25 = vpop.eup %1283  ;;  %v1887_v57 = vadd.f32 1.0, %v1282_v20 }
 0x14b   :  { %v1286_v30 = vpop.eup %1285  ;;  %v376_v11 = vmul.f32 %v1284_v25, %v372_v52  ;;  %vm381_vm10 = vweird.f32 %v1284_v25 }
 0x14c   :  { %v1288_v46 = vpop.eup %1287  ;;  %v507_v58 = vmul.f32 %v1286_v30, %v503_v4  ;;  %1291 = vrcp.f32 %v1887_v57  ;;  %vm512_vm11 = vweird.f32 %v1286_v30  ;;  %vm382_vm15 = vmor %vm380_vm12, %vm381_vm10  ;;  %vm395_vm4 = vweird.f32 %v1887_v57 }
 0x14d   :  { %v377_v26 = vsub.f32 1.0, %v376_v11  ;;  %v1891_v43 = vadd.f32 1.0, %v1288_v46  ;;  %v1290_v8 = vpop.eup %1289  ;;  %vm513_vm0 = vmor %vm511_vm13, %vm512_vm11  ;;  %v401_v46 = vand.u32 2147483648, %v1887_v57  ;;  %v636_v49 = vpop.f32.mrf.mxu3 }
 0x14e   :  { %v508_v15 = vsub.f32 1.0, %v507_v58 }
 0x14f   :  { %v378_v10 = vmul.f32 %v1284_v25, %v377_v26  ;;  %1293 = vrcp.f32 %v1891_v43  ;;  %vm526_vm5 = vweird.f32 %v1891_v43  ;;  %v402_v27 = vor.u32 1.1754944e-38, %v401_v46 }
 0x150   :  { %v509_v28 = vmul.f32 %v1286_v30, %v508_v15  ;;  %1295 = vpow2.f32 %v1186_v39  ;;  %v530_v13 = vand.u32 2147483647, %v1891_v43 }
 0x151   :  { %v379_v5 = vadd.f32 %v1284_v25, %v378_v10  ;;  %1297 = vpow2.f32 %v1203_v14  ;;  %v532_v14 = vand.u32 2147483648, %v1891_v43 }
 0x152   :  { %v1292_v47 = vpop.eup %1291  ;;  %v510_v54 = vadd.f32 %v1286_v30, %v509_v28  ;;  %1299 = vpow2.f32 %v1193_v1  ;;  %vm531_vm11 = vcmp.eq.f32.partialorder %v530_v13, 8.507059e+37 }
 0x153   :  { %v383_v20 = vsel %vm382_vm15, %v1284_v25, %v379_v5  ;;  %v391_v41 = vmul.f32 %v1292_v47, %v1887_v57  ;;  %1301 = vpow2.f32 %v1202_v62  ;;  %vm396_vm3 = vweird.f32 %v1292_v47 }
 0x154   :  { %v388_v52 = vsel %vm385_vm14, %v387_v16, %v383_v20  ;;  %v514_v42 = vsel %vm513_vm0, %v1286_v30, %v510_v54  ;;  %1303 = vtanh.f32 %v593_v55  ;;  %v399_v62 = vand.u32 2147483647, %v1887_v57  ;;  %vm397_vm7 = vmor %vm395_vm4, %vm396_vm3 }
 0x155   :  { %v1294_v4 = vpop.eup %1293  ;;  %v519_v44 = vsel %vm516_vm1, %v518_v33, %v514_v42  ;;  %v702_v11 = vmul.f32 %v1290_v8, %v388_v52  ;;  %v392_v29 = vsub.f32 1.0, %v391_v41  ;;  %v641_v57 = vadd.f32 %v636_v49, %v1549_v6 }
 0x156   :  { %v699_v58 = vmul.f32 %v519_v44, %v1750_v36  ;;  %v522_v25 = vmul.f32 %v1294_v4, %v1891_v43  ;;  %v1296_v30 = vpop.eup %1295  ;;  %vm527_vm6 = vweird.f32 %v1294_v4  ;;  %vm400_vm8 = vcmp.eq.f32.partialorder %v399_v62, 8.507059e+37 }
 0x157   :  { %v393_v26 = vmul.f32 %v1292_v47, %v392_v29  ;;  %v1298_v48 = vpop.eup %1297  ;;  %v1907_v51 = vadd.f32 1.0, %v1296_v30  ;;  %vm528_vm10 = vmor %vm526_vm5, %vm527_vm6  ;;  %v533_v20 = vor.u32 1.1754944e-38, %v532_v14 }
 0x158   :  { %v1904_v39 = vadd.f32 %v702_v11, %v699_v58  ;;  %v523_v15 = vsub.f32 1.0, %v522_v25  ;;  %v1300_v36 = vpop.eup %1299  ;;  %v1915_v33 = vadd.f32 1.0, %v1298_v48  ;;  %v1204_v11 = vmul.f32 -1.442695, %v641_v57 }
 0x159   :  { %v394_v10 = vadd.f32 %v1292_v47, %v393_v26  ;;  %v1302_v1 = vpop.eup %1301  ;;  %v505_v8 = vadd.f32 1.0, %v1300_v36  ;;  %1305 = vrcp.f32 %v1907_v51  ;;  %v416_v26 = vand.u32 2147483648, %v1907_v51 }
 0x15a   :  { %v524_v28 = vmul.f32 %v1294_v4, %v523_v15  ;;  %v1304_v16 = vpop.eup %1303  ;;  %v1919_v52 = vadd.f32 1.0, %v1302_v1  ;;  %vm410_vm14 = vweird.f32 %v1907_v51 }
 0x15b   :  { %v398_v5 = vsel %vm397_vm7, %v1292_v47, %v394_v10  ;;  %1307 = vrcp.f32 %v505_v8  ;;  %v589_v47 = vpop.f32.mrf.mxu2  ;;  %v547_v62 = vand.u32 2147483648, %v505_v8  ;;  %v545_v36 = vand.u32 2147483647, %v505_v8 }
 0x15c   :  { %v403_v54 = vsel %vm400_vm8, %v402_v27, %v398_v5  ;;  %v525_v55 = vadd.f32 %v1294_v4, %v524_v28  ;;  %1309 = vrcp.f32 %v1915_v33  ;;  %v594_v46 = vadd.f32 %v589_v47, %v1700_v3 }
 0x15d   :  { %v703_v41 = vmul.f32 %v1304_v16, %v403_v54  ;;  %1311 = vpow2.f32 %v1204_v11  ;;  %v414_v3 = vand.u32 2147483647, %v1907_v51  ;;  %vm541_vm15 = vweird.f32 %v505_v8 }
 0x15e   :  { %v529_v42 = vsel %vm528_vm10, %v1294_v4, %v525_v55  ;;  %1313 = vrcp.f32 %v1919_v52  ;;  %v417_v28 = vor.u32 1.1754944e-38, %v416_v26  ;;  %v548_v5 = vor.u32 1.1754944e-38, %v547_v62 }
 0x15f   :  { %v534_v44 = vsel %vm531_vm11, %v533_v20, %v529_v42  ;;  %v1306_v29 = vpop.eup %1305  ;;  %1315 = vtanh.f32 %v594_v46  ;;  %vm415_vm3 = vcmp.eq.f32.partialorder %v414_v3, 8.507059e+37  ;;  %vm546_vm4 = vcmp.eq.f32.partialorder %v545_v36, 8.507059e+37 }
 0x160   :  { %v700_v6 = vmul.f32 %v534_v44, %v1726_v12  ;;  %v406_v58 = vmul.f32 %v1306_v29, %v1907_v51  ;;  %vm411_vm12 = vweird.f32 %v1306_v29  ;;  %vm674_vm8 = vweird.f32 %v1915_v33 }
 0x161   :  { %v1308_v63 = vpop.eup %1307  ;;  %vm412_vm0 = vmor %vm410_vm14, %vm411_vm12  ;;  %vm659_vm12 = vweird.f32 %v1919_v52 }
 0x162   :  { %v1925_v43 = vadd.f32 %v703_v41, %v700_v6  ;;  %v537_v4 = vmul.f32 %v1308_v63, %v505_v8  ;;  %v407_v25 = vsub.f32 1.0, %v406_v58  ;;  %v1929_v12 = vpop.eup %1309  ;;  %vm542_vm13 = vweird.f32 %v1308_v63 }
 0x163   :  { %v1312_v15 = vpop.eup %1311  ;;  %v670_v1 = vmul.f32 %v1929_v12, %v1915_v33  ;;  %vm543_vm1 = vmor %vm541_vm15, %vm542_vm13  ;;  %vm675_vm5 = vweird.f32 %v1929_v12 }
 0x164   :  { %v538_v30 = vsub.f32 1.0, %v537_v4  ;;  %v408_v48 = vmul.f32 %v1306_v29, %v407_v25  ;;  %v1932_v14 = vpop.eup %1313  ;;  %v653_v27 = vadd.f32 1.0, %v1312_v15  ;;  %vm1952_vm10 = vmor %vm674_vm8, %vm675_vm5 }
 0x165   :  { %v1316_v16 = vpop.eup %1315  ;;  %v655_v54 = vmul.f32 %v1932_v14, %v1919_v52  ;;  %v671_v42 = vsub.f32 1.0, %v670_v1  ;;  %vm660_vm7 = vweird.f32 %v1932_v14 }
 0x166   :  { %v539_v49 = vmul.f32 %v1308_v63, %v538_v30  ;;  %v409_v10 = vadd.f32 %v1306_v29, %v408_v48  ;;  %1317 = vrcp.f32 %v653_v27  ;;  %v680_v30 = vand.u32 2147483648, %v1915_v33  ;;  %vm1967_vm15 = vmor %vm659_vm12, %vm660_vm7 }
 0x167   :  { %v656_v47 = vsub.f32 1.0, %v655_v54  ;;  %v672_v6 = vmul.f32 %v1929_v12, %v671_v42  ;;  %vm689_vm11 = vweird.f32 %v653_v27  ;;  %v678_v48 = vand.u32 2147483647, %v1915_v33 }
 0x168   :  { %v540_v13 = vadd.f32 %v1308_v63, %v539_v49  ;;  %v413_v57 = vsel %vm412_vm0, %v1306_v29, %v409_v10  ;;  %v665_v49 = vand.u32 2147483648, %v1919_v52 }
 0x169   :  { %v418_v55 = vsel %vm415_vm3, %v417_v28, %v413_v57  ;;  %v657_v46 = vmul.f32 %v1932_v14, %v656_v47  ;;  %v673_v25 = vadd.f32 %v1929_v12, %v672_v6  ;;  %vm679_vm0 = vcmp.eq.f32.partialorder %v678_v48, 8.507059e+37 }
 0x16a   :  { %v544_v20 = vsel %vm543_vm1, %v1308_v63, %v540_v13  ;;  %v704_v41 = vmul.f32 %v1316_v16, %v418_v55  ;;  %v695_v63 = vand.u32 2147483648, %v653_v27  ;;  %v681_v13 = vor.u32 1.1754944e-38, %v680_v30 }
 0x16b   :  { %v549_v51 = vsel %vm546_vm4, %v548_v5, %v544_v20  ;;  %v658_v3 = vadd.f32 %v1932_v14, %v657_v46  ;;  %v677_v1 = vsel %vm1952_vm10, %v1929_v12, %v673_v25  ;;  %v666_v55 = vor.u32 1.1754944e-38, %v665_v49 }
 0x16c   :  { %v701_v8 = vmul.f32 %v549_v51, %v1689_v0  ;;  %v1318_v11 = vpop.eup %1317  ;;  %v693_v0 = vand.u32 2147483647, %v653_v27  ;;  %v696_v36 = vor.u32 1.1754944e-38, %v695_v63  ;;  %v682_v12 = vsel %vm679_vm0, %v681_v13, %v677_v1 }
 0x16d   :  { %v685_v29 = vmul.f32 %v1318_v11, %v653_v27  ;;  %vm690_vm6 = vweird.f32 %v1318_v11  ;;  %v663_v27 = vand.u32 2147483647, %v1919_v52  ;;  %v662_v16 = vsel %vm1967_vm15, %v1932_v14, %v658_v3  ;;  %v1172_v14 = vld [vmem:[%s2147_s4 + $0x1] sm:$0x1] }
 0x16e   :  { %v1940_v44 = vadd.f32 %v704_v41, %v701_v8  ;;  %vm691_vm13 = vmor %vm689_vm11, %vm690_vm6  ;;  %vm694_vm14 = vcmp.eq.f32.partialorder %v693_v0, 8.507059e+37 }
 0x16f   :  { %v686_v58 = vsub.f32 1.0, %v685_v29  ;;  %vm664_vm1 = vcmp.eq.f32.partialorder %v663_v27, 8.507059e+37 }
 0x170   :  { %1319 = vtanh.f32 %v1940_v44  ;;  %v667_v20 = vsel %vm664_vm1, %v666_v55, %v662_v16 }
 0x171   :  { %1321 = vtanh.f32 %v1925_v43  ;;  %v687_v4 = vmul.f32 %v1318_v11, %v686_v58 }
 0x172   :  { %1323 = vtanh.f32 %v1904_v39 }
 0x173   :  { %v688_v62 = vadd.f32 %v1318_v11, %v687_v4 }
 0x175   :  { %v692_v10 = vsel %vm691_vm13, %v1318_v11, %v688_v62 }
 0x176   :  { %v1320_v15 = vpop.eup %1319  ;;  %v697_v5 = vsel %vm694_vm14, %v696_v36, %v692_v10 }
 0x177   :  { %v1322_v28 = vpop.eup %1321  ;;  %v713_v57 = vmul.f32 %v1320_v15, %v697_v5 }
 0x178   :  { %v1324_v54 = vpop.eup %1323  ;;  %v712_v52 = vmul.f32 %v1322_v28, %v682_v12 }
 0x179   :  { %1205 = vmatpush.msk.msrb.mxu0 %vm330_vm2, %v713_v57  ;;  %1209 = vmatpush.msk.msrb.mxu2 %vm330_vm2, %v713_v57  ;;  %v711_v51 = vmul.f32 %v1324_v54, %v667_v20 }
 0x17a   :  { %1216 = vmatpush.msk.msrb.mxu3 %vm330_vm2, %v713_v57  ;;  %1227 = vmatpush.msk.msra.mxu1 %vm330_vm2, %v713_v57 }
 0x17b   :  { %734 = vmatpush.msrb.mxu0 %v712_v52  ;;  %784 = vmatpush.msrb.mxu2 %v712_v52 }
 0x17c   :  { %876 = vmatpush.msrb.mxu3 %v712_v52  ;;  %1006 = vmatpush.msra.mxu1 %v712_v52 }
 0x17d   :  { %735 = vmatpush.msrb.mxu0 %v711_v51  ;;  %785 = vmatpush.msrb.mxu2 %v711_v51 }
 0x17e   :  { %877 = vmatpush.msrb.mxu3 %v711_v51  ;;  %1007 = vmatpush.msra.mxu1 %v711_v51 }
 0x17f   :  { %1206 = vmatmul.msk.f32.vlgmr.msrb.gmra.mxu0 %vm320_vm9, %v1172_v14  ;;  %1210 = vmatmul.msk.f32.vlgmr.msrb.gmra.mxu2 %vm320_vm9, %v1793_v31 }
 0x180   :  { %1217 = vmatmul.msk.f32.vlgmr.msrb.gmra.mxu3 %vm320_vm9, %v1798_v2  ;;  %1223 = vmatpush.msk.msra.mxu0 %vm330_vm2, %v713_v57 }
 0x181   :  { %1228 = vmatmul.msk.f32.vlgmr.msra.gmra.mxu1 %vm320_vm9, %v1808_v21 }
 0x182   :  { %968 = vmatpush.msra.mxu0 %v712_v52 }
 0x184   :  { %969 = vmatpush.msra.mxu0 %v711_v51 }
 0x187   :  { %1211 = vmatmul.msk.f32.gmra.mxu2 %vm320_vm9, %v1822_v22  ;;  %1224 = vmatmul.msk.f32.vlgmr.msra.gmra.mxu0 %vm320_vm9, %v1803_v17 }
 0x188   :  { %1218 = vmatmul.msk.f32.gmra.mxu3 %vm320_vm9, %v1827_v24 }
 0x189   :  { %1229 = vmatmul.msk.f32.gmra.mxu1 %vm320_vm9, %v1837_v61 }
 0x18f   :  { %1212 = vmatmul.msk.f32.gmra.mxu2 %vm320_vm9, %v1850_v60  ;;  %1225 = vmatmul.msk.f32.gmra.mxu0 %vm320_vm9, %v1832_v19 }
 0x190   :  { %1219 = vmatmul.msk.f32.gmra.mxu3 %vm320_vm9, %v1855_v23 }
 0x191   :  { %1230 = vmatmul.msk.f32.gmra.mxu1 %vm320_vm9, %v1865_v32 }
 0x197   :  { %1226 = vmatmul.msk.f32.gmra.mxu0 %vm320_vm9, %v1860_v45 }
 0x1c6   :  { %v760_v31 = vpop.f32.mrf.mxu1 }
 0x1fc   :  { %v737_v2 = vpop.f32.mrf.mxu0 }
 0x1fd   :  { %v2007_v17 = vadd.f32 %v760_v31, %v737_v2 }
 0x1fe   :  { %v1009_v21 = vpop.f32.mrf.mxu1 }
 0x1ff   :  { %v1018_v22 = vadd.f32 %v1009_v21, %v1576_v34 }
 0x201   :  { %v1231_v24 = vmul.f32 -1.442695, %v1018_v22 }
 0x202   :  { %v787_v61 = vpop.f32.mrf.mxu2 }
 0x203   :  { %v796_v19 = vadd.f32 %v787_v61, %v1535_v53  ;;  %v879_v60 = vpop.f32.mrf.mxu3  ;;  %1325 = vpow2.f32 %v1231_v24 }
 0x204   :  { %v888_v23 = vadd.f32 %v879_v60, %v1788_v35  ;;  %v971_v8 = vpop.f32.mrf.mxu0 }
 0x205   :  { %v1213_v41 = vmul.f32 -1.442695, %v796_v19  ;;  %v980_v26 = vadd.f32 %v971_v8, %v1702_v59 }
 0x206   :  { %v1220_v32 = vmul.f32 -1.442695, %v888_v23  ;;  %v1012_v42 = vpop.f32.mrf.mxu1 }
 0x207   :  { %1327 = vpow2.f32 %v1213_v41  ;;  %v1019_v45 = vadd.f32 %v1012_v42, %v1582_v37 }
 0x208   :  { %1329 = vpow2.f32 %v1220_v32 }
 0x209   :  { %v1232_v47 = vmul.f32 -1.442695, %v1019_v45  ;;  %v1326_v29 = vpop.eup %1325 }
 0x20a   :  { %v790_v11 = vpop.f32.mrf.mxu2  ;;  %v2018_v30 = vadd.f32 1.0, %v1326_v29 }
 0x20b   :  { %v797_v34 = vadd.f32 %v790_v11, %v1539_v56  ;;  %v882_v6 = vpop.f32.mrf.mxu3  ;;  %1331 = vpow2.f32 %v1232_v47 }
 0x20c   :  { %v889_v53 = vadd.f32 %v882_v6, %v1776_v50  ;;  %v974_v62 = vpop.f32.mrf.mxu0  ;;  %v1042_v33 = vand.u32 2147483647, %v2018_v30  ;;  %v1044_v2 = vand.u32 2147483648, %v2018_v30 }
 0x20d   :  { %v1328_v46 = vpop.eup %1327  ;;  %v1214_v35 = vmul.f32 -1.442695, %v797_v34  ;;  %v981_v57 = vadd.f32 %v974_v62, %v1721_v18 }
 0x20e   :  { %v1330_v58 = vpop.eup %1329  ;;  %v808_v63 = vadd.f32 1.0, %v1328_v46  ;;  %v1221_v4 = vmul.f32 -1.442695, %v889_v53  ;;  %v1015_v0 = vpop.f32.mrf.mxu1 }
 0x20f   :  { %v2015_v25 = vadd.f32 1.0, %v1330_v58  ;;  %1333 = vpow2.f32 %v1214_v35  ;;  %v1020_v37 = vadd.f32 %v1015_v0, %v1551_v7 }
 0x210   :  { %1335 = vrcp.f32 %v808_v63  ;;  %v820_v5 = vand.u32 2147483647, %v808_v63  ;;  %v822_v52 = vand.u32 2147483648, %v808_v63  ;;  %vm816_vm5 = vweird.f32 %v808_v63 }
 0x211   :  { %1337 = vrcp.f32 %v2015_v25  ;;  %v1332_v56 = vpop.eup %1331  ;;  %v1233_v3 = vmul.f32 -1.442695, %v1020_v37  ;;  %v914_v12 = vand.u32 2147483648, %v2015_v25  ;;  %v912_v14 = vand.u32 2147483647, %v2015_v25 }
 0x212   :  { %1339 = vpow2.f32 %v1221_v4  ;;  %v793_v50 = vpop.f32.mrf.mxu2  ;;  %v2024_v36 = vadd.f32 1.0, %v1332_v56  ;;  %vm908_vm6 = vweird.f32 %v2015_v25  ;;  %vm2043_vm7 = vcmp.eq.f32.partialorder %v820_v5, 8.507059e+37 }
 0x213   :  { %v885_v48 = vpop.f32.mrf.mxu3  ;;  %v798_v15 = vadd.f32 %v793_v50, %v1525_v40  ;;  %1341 = vrcp.f32 %v2018_v30  ;;  %v915_v23 = vor.u32 1.1754944e-38, %v914_v12  ;;  %v823_v41 = vor.u32 1.1754944e-38, %v822_v52 }
 0x214   :  { %v890_v7 = vadd.f32 %v885_v48, %v1754_v38  ;;  %1343 = vtanh.f32 %v980_v26  ;;  %v977_v61 = vpop.f32.mrf.mxu0  ;;  %vm913_vm11 = vcmp.eq.f32.partialorder %v912_v14, 8.507059e+37 }
 0x215   :  { %v1334_v49 = vpop.eup %1333  ;;  %v1215_v27 = vmul.f32 -1.442695, %v798_v15  ;;  %1345 = vpow2.f32 %v1233_v3  ;;  %v982_v6 = vadd.f32 %v977_v61, %v1745_v9 }
 0x216   :  { %v1336_v10 = vpop.eup %1335  ;;  %v2027_v1 = vadd.f32 1.0, %v1334_v49  ;;  %v1222_v54 = vmul.f32 -1.442695, %v890_v7 }
 0x217   :  { %v1338_v59 = vpop.eup %1337  ;;  %v812_v28 = vmul.f32 %v1336_v10, %v808_v63  ;;  %vm817_vm3 = vweird.f32 %v1336_v10 }
 0x218   :  { %v1340_v13 = vpop.eup %1339  ;;  %v904_v40 = vmul.f32 %v1338_v59, %v2015_v25  ;;  %1347 = vrcp.f32 %v2027_v1  ;;  %vm909_vm4 = vweird.f32 %v1338_v59  ;;  %vm818_vm8 = vmor %vm816_vm5, %vm817_vm3  ;;  %vm831_vm12 = vweird.f32 %v2027_v1 }
 0x219   :  { %v813_v16 = vsub.f32 1.0, %v812_v28  ;;  %1349 = vrcp.f32 %v2024_v36  ;;  %v2034_v38 = vadd.f32 1.0, %v1340_v13  ;;  %v2037_v20 = vpop.eup %1341  ;;  %vm910_vm10 = vmor %vm908_vm6, %vm909_vm4  ;;  %v837_v0 = vand.u32 2147483648, %v2027_v1 }
 0x21a   :  { %v905_v55 = vsub.f32 1.0, %v904_v40  ;;  %1351 = vpow2.f32 %v1215_v27  ;;  %v1344_v18 = vpop.eup %1343  ;;  %v1034_v60 = vmul.f32 %v2037_v20, %v2018_v30  ;;  %v835_v9 = vand.u32 2147483647, %v2027_v1 }
 0x21b   :  { %v814_v51 = vmul.f32 %v1336_v10, %v813_v16  ;;  %1353 = vrcp.f32 %v2034_v38  ;;  %v1346_v21 = vpop.eup %1345  ;;  %v929_v3 = vand.u32 2147483648, %v2034_v38  ;;  %v927_v27 = vand.u32 2147483647, %v2034_v38 }
 0x21c   :  { %v906_v31 = vmul.f32 %v1338_v59, %v905_v55  ;;  %1355 = vpow2.f32 %v1222_v54  ;;  %v2058_v58 = vadd.f32 1.0, %v1346_v21  ;;  %v1035_v49 = vsub.f32 1.0, %v1034_v60 }
 0x21d   :  { %v815_v22 = vadd.f32 %v1336_v10, %v814_v51  ;;  %1357 = vtanh.f32 %v981_v57  ;;  %vm836_vm0 = vcmp.eq.f32.partialorder %v835_v9, 8.507059e+37  ;;  %vm923_vm1 = vweird.f32 %v2034_v38 }
 0x21e   :  { %v1348_v19 = vpop.eup %1347  ;;  %v907_v32 = vadd.f32 %v1338_v59, %v906_v31  ;;  %v930_v5 = vor.u32 1.1754944e-38, %v929_v3  ;;  %vm1038_vm4 = vweird.f32 %v2018_v30  ;;  %vm2081_vm5 = vcmp.eq.f32.partialorder %v1042_v33, 8.507059e+37 }
 0x21f   :  { %v2050_v42 = vpop.eup %1349  ;;  %v819_v45 = vsel %vm818_vm8, %v1336_v10, %v815_v22  ;;  %v827_v8 = vmul.f32 %v1348_v19, %v2027_v1  ;;  %vm832_vm13 = vweird.f32 %v1348_v19  ;;  %v838_v10 = vor.u32 1.1754944e-38, %v837_v0 }
 0x220   :  { %v1352_v47 = vpop.eup %1351  ;;  %v824_v11 = vsel %vm2043_vm7, %v823_v41, %v819_v45  ;;  %v911_v34 = vsel %vm910_vm10, %v1338_v59, %v907_v32  ;;  %v1049_v56 = vmul.f32 %v2050_v42, %v2024_v36  ;;  %vm833_vm15 = vmor %vm831_vm12, %vm832_vm13  ;;  %vm928_vm6 = vcmp.eq.f32.partialorder %v927_v27, 8.507059e+37 }
 0x221   :  { %v1354_v29 = vpop.eup %1353  ;;  %v916_v53 = vsel %vm913_vm11, %v915_v23, %v911_v34  ;;  %v1081_v46 = vmul.f32 %v1344_v18, %v824_v11  ;;  %v828_v35 = vsub.f32 1.0, %v827_v8  ;;  %v2063_v25 = vadd.f32 1.0, %v1352_v47 }
 0x222   :  { %v1078_v63 = vmul.f32 %v916_v53, %v1904_v39  ;;  %v919_v4 = vmul.f32 %v1354_v29, %v2034_v38  ;;  %v1356_v37 = vpop.eup %1355  ;;  %vm924_vm14 = vweird.f32 %v1354_v29  ;;  %v1050_v28 = vsub.f32 1.0, %v1049_v56 }
 0x223   :  { %v829_v26 = vmul.f32 %v1348_v19, %v828_v35  ;;  %1359 = vrcp.f32 %v2063_v25  ;;  %v2069_v48 = vadd.f32 1.0, %v1356_v37  ;;  %v1358_v39 = vpop.eup %1357  ;;  %vm925_vm3 = vmor %vm923_vm1, %vm924_vm14  ;;  %v1036_v55 = vmul.f32 %v2037_v20, %v1035_v49 }
 0x224   :  { %v1084_v50 = vadd.f32 %v1081_v46, %v1078_v63  ;;  %v920_v62 = vsub.f32 1.0, %v919_v4  ;;  %1361 = vrcp.f32 %v2058_v58  ;;  %v1045_v38 = vor.u32 1.1754944e-38, %v1044_v2 }
 0x225   :  { %v830_v15 = vadd.f32 %v1348_v19, %v829_v26  ;;  %1363 = vrcp.f32 %v2069_v48  ;;  %v1051_v14 = vmul.f32 %v2050_v42, %v1050_v28  ;;  %vm1053_vm7 = vweird.f32 %v2024_v36 }
 0x226   :  { %v921_v7 = vmul.f32 %v1354_v29, %v920_v62  ;;  %1365 = vtanh.f32 %v1084_v50  ;;  %v1057_v18 = vand.u32 2147483647, %v2024_v36  ;;  %v1037_v31 = vadd.f32 %v2037_v20, %v1036_v55 }
 0x227   :  { %v834_v59 = vsel %vm833_vm15, %v1348_v19, %v830_v15  ;;  %1367 = vtanh.f32 %v982_v6  ;;  %v850_v2 = vand.u32 2147483647, %v2063_v25  ;;  %vm1054_vm8 = vweird.f32 %v2050_v42 }
 0x228   :  { %v839_v13 = vsel %vm836_vm0, %v838_v10, %v834_v59  ;;  %v922_v40 = vadd.f32 %v1354_v29, %v921_v7  ;;  %vm1039_vm10 = vweird.f32 %v2037_v20  ;;  %v852_v60 = vand.u32 2147483648, %v2063_v25  ;;  %vm2116_vm14 = vmor %vm1053_vm7, %vm1054_vm8 }
 0x229   :  { %v1082_v57 = vmul.f32 %v1358_v39, %v839_v13  ;;  %v1360_v16 = vpop.eup %1359  ;;  %vm1040_vm11 = vmor %vm1038_vm4, %vm1039_vm10  ;;  %v1052_v41 = vadd.f32 %v2050_v42, %v1051_v14  ;;  %v1059_v8 = vand.u32 2147483648, %v2024_v36  ;;  %v944_v11 = vand.u32 2147483648, %v2069_v48  ;;  %v1173_v13 = vld [vmem:[%s2147_s4 + $0x2] sm:$0x1] }
 0x22a   :  { %v926_v54 = vsel %vm925_vm3, %v1354_v29, %v922_v40  ;;  %v2088_v12 = vpop.eup %1361  ;;  %v842_v51 = vmul.f32 %v1360_v16, %v2063_v25  ;;  %vm847_vm12 = vweird.f32 %v1360_v16  ;;  %v1041_v32 = vsel %vm1040_vm11, %v2037_v20, %v1037_v31  ;;  %v1123_v40 = vpop.permute.xlu0 %1122 }
 0x22b   :  { %v931_v52 = vsel %vm928_vm6, %v930_v5, %v926_v54  ;;  %v1364_v21 = vpop.eup %1363  ;;  %v1064_v19 = vmul.f32 %v2088_v12, %v2058_v58  ;;  %v1046_v47 = vsel %vm2081_vm5, %v1045_v38, %v1041_v32  ;;  %vm846_vm13 = vweird.f32 %v2063_v25 }
 0x22c   :  { %v1079_v33 = vmul.f32 %v931_v52, %v1925_v43  ;;  %v843_v22 = vsub.f32 1.0, %v842_v51  ;;  %v1366_v24 = vpop.eup %1365  ;;  %v934_v43 = vmul.f32 %v1364_v21, %v2069_v48  ;;  %vm939_vm15 = vweird.f32 %v1364_v21  ;;  %vm848_vm0 = vmor %vm846_vm13, %vm847_vm12 }
 0x22d   :  { %v1090_v20 = vmul.f32 %v1366_v24, %v1046_v47  ;;  %v1368_v6 = vpop.eup %1367  ;;  %v853_v53 = vor.u32 1.1754944e-38, %v852_v60  ;;  %v942_v46 = vand.u32 2147483647, %v2069_v48  ;;  %v1065_v35 = vsub.f32 1.0, %v1064_v19 }
 0x22e   :  { %v1085_v61 = vadd.f32 %v1082_v57, %v1079_v33  ;;  %v844_v23 = vmul.f32 %v1360_v16, %v843_v22  ;;  %v935_v45 = vsub.f32 1.0, %v934_v43  ;;  %vm851_vm1 = vcmp.eq.f32.partialorder %v850_v2, 8.507059e+37 }
 0x22f   :  { %v1056_v36 = vsel %vm2116_vm14, %v2050_v42, %v1052_v41  ;;  %vm938_vm3 = vweird.f32 %v2069_v48  ;;  %v1060_v25 = vor.u32 1.1754944e-38, %v1059_v8  ;;  %v945_v37 = vor.u32 1.1754944e-38, %v944_v11 }
 0x230   :  { %1369 = vtanh.f32 %v1085_v61  ;;  %v845_v34 = vadd.f32 %v1360_v16, %v844_v23  ;;  %v936_v29 = vmul.f32 %v1364_v21, %v935_v45  ;;  %vm940_vm4 = vmor %vm938_vm3, %vm939_vm15  ;;  %vm1058_vm5 = vcmp.eq.f32.partialorder %v1057_v18, 8.507059e+37 }
 0x231   :  { %vm943_vm6 = vcmp.eq.f32.partialorder %v942_v46, 8.507059e+37  ;;  %v1061_v50 = vsel %vm1058_vm5, %v1060_v25, %v1056_v36  ;;  %v1066_v62 = vmul.f32 %v2088_v12, %v1065_v35  ;;  %vm1069_vm7 = vweird.f32 %v2088_v12 }
 0x232   :  { %v849_v63 = vsel %vm848_vm0, %v1360_v16, %v845_v34  ;;  %v937_v0 = vadd.f32 %v1364_v21, %v936_v29  ;;  %v1074_v49 = vand.u32 2147483648, %v2058_v58  ;;  %vm1068_vm8 = vweird.f32 %v2058_v58 }
 0x233   :  { %v854_v4 = vsel %vm851_vm1, %v853_v53, %v849_v63  ;;  %v1067_v48 = vadd.f32 %v2088_v12, %v1066_v62  ;;  %v1072_v7 = vand.u32 2147483647, %v2058_v58  ;;  %vm1070_vm10 = vmor %vm1068_vm8, %vm1069_vm7  ;;  %v1125_v5 = vperm.slane %v1123_v40, 0 }
 0x234   :  { %v1083_v56 = vmul.f32 %v1368_v6, %v854_v4  ;;  %v941_v9 = vsel %vm940_vm4, %v1364_v21, %v937_v0  ;;  %v1075_v27 = vor.u32 1.1754944e-38, %v1074_v49 }
 0x235   :  { %v946_v39 = vsel %vm943_vm6, %v945_v37, %v941_v9  ;;  %v1071_v10 = vsel %vm1070_vm10, %v2088_v12, %v1067_v48  ;;  %vm1073_vm11 = vcmp.eq.f32.partialorder %v1072_v7, 8.507059e+37 }
 0x236   :  { %v1370_v26 = vpop.eup %1369  ;;  %v1080_v15 = vmul.f32 %v946_v39, %v1940_v44  ;;  %v1076_v28 = vsel %vm1073_vm11, %v1075_v27, %v1071_v10 }
 0x237   :  { %v1091_v3 = vmul.f32 %v1370_v26, %v1061_v50 }
 0x238   :  { %v1086_v42 = vadd.f32 %v1083_v56, %v1080_v15 }
 0x23a   :  { %1371 = vtanh.f32 %v1086_v42 }
 0x240   :  { %v1372_v59 = vpop.eup %1371 }
 0x241   :  { %v1092_v44 = vmul.f32 %v1372_v59, %v1076_v28 }
 0x243   :  { %1234 = vmatpush.msk.msra.mxu2 %vm330_vm2, %v1092_v44  ;;  %vm1127_vm2 = vcmask 24576  }
 0x245   :  { %1113 = vmatpush.msra.mxu2 %v1091_v3 }
 0x247   :  { %1114 = vmatpush.msra.mxu2 %v1090_v20 }
 0x248   :  { %1235 = vmatmul.msk.f32.vlgmr.msra.gmra.mxu2 %vm320_vm9, %v1173_v13 }
 0x2cb   :  { %v1116_v58 = vpop.f32.mrf.mxu2 }
 0x2cc   :  { %v1119_v57 = vadd.f32 %v1116_v58, %v2007_v17 }
 0x2ce   :  { %v1126_v1 = vadd.f32 %v1125_v5, %v1119_v57 }
 0x2d0   :  { %1128 = vst.msk [vmem:[#allocation3] sm:$0x1] %vm1127_vm2, %v1126_v1 }
 0x2d1   :  { %1139 = dma.vmem_to_hbm [thread:$0]  %s1135_s3, 16, %s1137_s25, [#allocation4]  }
 0x2d2   :  { %1397 = dma.done.wait [#allocation4], 16  }
 0x2d3   :  { %1398 = vsyncadd [#allocation4], 4294967280 }
 0x2d4   :  { %1144 = vsyncpa [#allocation4], 1 }

</bundles_post_ra>
